<compile_context>
chip_gen: v7x
topology: tpu7x:2x2x1
jax: 0.10.0
libtpu: 0.0.40
codegen_flags: <defaults>
</compile_context>

<pallas_src>
import jax
import jax.numpy as jnp
from jax import lax
from jax.experimental import pallas as pl
from jax.experimental.pallas import tpu as pltpu


# ----------------------------- pass 1: conv + partial BN stats -----------------

def _make_conv_kernel(k, s, Th, Wo, Cin, Cout, KK, KKp, TW, cdtype):
    """kernel refs:
       body_ref : [1, 1, Th*s, Cin, Wp]   non-overlapping row block of the padded input
       halo_ref : [1, 1, max(k-s,1), Cin, Wp]   the (k-s) extra rows this tile needs
       w_ref    : [Cout, KKp]             weights, contraction dim zero-padded to KKp
       y_ref    : [1, Cout, Th*Wo]        conv output tile (lane-dense)
       ps/pss   : [1, 1, Cout, 1]         per-tile partial sum / sum^2 (BN stats)
       slab_ref : VMEM [KKp, Th*Wo]       im2col slab (compute dtype)
       acc_ref  : VMEM [Cout, Th*Wo] f32  matmul result
    """
    Tb = Th * s                    # body rows per tile
    n_rows = Tb + (k - s)          # padded-input rows this tile touches

    def kernel(body_ref, halo_ref, w_ref, y_ref, ps_ref, pss_ref, slab_ref, acc_ref):
        if KKp > KK:               # keep the zero-padded contraction rows clean
            slab_ref[KK:, :] = jnp.zeros((KKp - KK, TW), cdtype)

        # in-VMEM im2col:  slab[(i*k+j)*Cin + c, r*Wo + w] = x[c, r*s + i, w*s + j]
        # (each input row is loaded once; k^2 lane-offset copies per row)
        for rr in range(n_rows):
            if rr < Tb:
                src, ri = body_ref, rr
            else:
                src, ri = halo_ref, rr - Tb
            if s == 1:
                row = src[0, 0, ri, :, :]                       # [Cin, Wp]
            for i in range(k):
                r, rem = divmod(rr - i, s)
                if rem != 0 or r < 0 or r >= Th:
                    continue
                for j in range(k):
                    tap = i * k + j
                    if s == 1:
                        seg = row[:, j:j + Wo]
                    else:
                        # TODO(synk): for stride>1, pre-deinterleave columns by residue
                        #             class in the wrapper to avoid strided lane reads.
                        seg = src[0, 0, ri, :, pl.ds(j, Wo, stride=s)]
                    slab_ref[tap * Cin:(tap + 1) * Cin, r * Wo:(r + 1) * Wo] = seg

        # one MXU matmul per tile: [Cout, KKp] @ [KKp, Th*Wo] -> f32
        acc_ref[...] = jnp.dot(w_ref[...], slab_ref[...],
                               preferred_element_type=jnp.float32)
        acc = acc_ref[...]
        ps_ref[0, 0] = jnp.sum(acc, axis=1, keepdims=True)        # [Cout, 1]
        pss_ref[0, 0] = jnp.sum(acc * acc, axis=1, keepdims=True)
        y_ref[0] = acc.astype(y_ref.dtype)                        # lane-dense store

    return kernel


# ----------------------------- pass 2: normalize + affine + LeakyReLU ----------

def _make_bn_act_kernel(leaky_slope):
    def kernel(y_ref, scale_ref, shift_ref, o_ref):
        z = y_ref[0].astype(jnp.float32) * scale_ref[...] + shift_ref[...]
        o_ref[0] = jnp.where(z >= 0, z, leaky_slope * z)
    return kernel


# ------------------------------ tiling helpers ----------------------------------

def _hw_budgets():
    """Per-generation knobs derived from VMEM capacity (v5e/v6e 128 MiB vs v7x 64 MiB)."""
    vmem = 64 * 1024 * 1024
    try:
        info = pltpu.get_tpu_info()
        vmem = int(getattr(info, "vmem_capacity_bytes", vmem) or vmem)
    except Exception:
        pass
    big = vmem >= 100 * 1024 * 1024
    pass1_cols = 2048 if big else 1024      # Th*Wo target for the conv pass
    pass2_cols = 16384 if big else 8192     # wider blocks for the bandwidth-bound pass
    vmem_limit = (64 if big else 32) * 1024 * 1024
    return pass1_cols, pass2_cols, vmem_limit


def _pick_row_tile(Ho, Wo, max_cols):
    """Largest divisor Th of Ho with Th*Wo lane-aligned (%128) and <= max_cols.
    If alignment is only possible above the budget, take the smallest aligned one
    (bounded VMEM) instead of silently using the whole image."""
    aligned = [d for d in range(1, Ho + 1) if Ho % d == 0 and (d * Wo) % 128 == 0]
    fitting = [d for d in aligned if d * Wo <= max_cols]
    if fitting:
        return max(fitting)
    if aligned:
        return min(aligned)
    # TODO(synk): lane-pad Wo (store [N,Cout,Ho,Wo_pad] and slice) so non-128-aligned
    #             widths can still be row-tiled; full-height tile fallback for now.
    return Ho


def _pick_pass2_cols(HW, TW, max_cols):
    T = HW // TW
    m = 1
    for cand in range(1, T + 1):
        if T % cand == 0 and TW * cand <= max_cols:
            m = cand
    return TW * m


# ------------------------------ forward wrapper ----------------------------------

def conv_block_forward(x, weight, bias, gamma, beta, kernel_size, stride,
                       eps=1e-5, leaky_slope=0.2, use_bf16=True, max_tile_cols=None):
    """x: (N, Cin, H, W) f32; weight: (Cout, Cin, k, k); bias/gamma/beta: (Cout,).
    Returns (N, Cout, Ho, Wo) f32 matching the PyTorch ConvBlock forward."""
    # NOTE: `bias` is intentionally unused: a constant per-channel shift before a
    # train-mode BatchNorm is exactly cancelled by the mean subtraction.  It must be
    # re-added if this kernel is ever reused with eval-mode running stats.
    N, Cin, H, W = x.shape
    Cout = weight.shape[0]
    k, s = int(kernel_size), int(stride)
    pad = (k - s + 1) // 2
    Hp, Wp = H + 2 * pad, W + 2 * pad
    Ho = (Hp - k) // s + 1
    Wo = (Wp - k) // s + 1
    HW = Ho * Wo
    KK = k * k * Cin
    KKp = ((KK + 7) // 8) * 8
    cdtype = jnp.bfloat16 if use_bf16 else jnp.float32

    pass1_cols, pass2_cols, vmem_limit = _hw_budgets()
    if max_tile_cols is None:
        max_tile_cols = pass1_cols
    Th = _pick_row_tile(Ho, Wo, int(max_tile_cols))
    T = Ho // Th
    TW = Th * Wo
    Tb = Th * s
    Hh = max(k - s, 1)

    # ReflectionPad2d + one cheap layout pass [N, Hp, Cin, Wp]: every padded row is a
    # contiguous [Cin(sublane), Wp(lane)] plane (no 128/Cin lane padding) + cast.
    x_pad = jnp.pad(x.astype(jnp.float32),
                    ((0, 0), (0, 0), (pad, pad), (pad, pad)), mode="reflect")
    x_t = jnp.transpose(x_pad, (0, 2, 1, 3)).astype(cdtype)        # [N, Hp, Cin, Wp]

    # Row-tile body (non-overlapping) + (k-s)-row halo per tile: per-step input DMA is
    # proportional to the tile; nothing image-sized stays resident in VMEM.
    x_body = x_t[:, :T * Tb].reshape(N, T, Tb, Cin, Wp)
    halo_idx = jnp.minimum(
        jnp.arange(T)[:, None] * Tb + Tb + jnp.arange(Hh)[None, :], Hp - 1)
    x_halo = x_t[:, halo_idx]                                      # [N, T, Hh, Cin, Wp]

    # torch weight (Cout, Cin, k, k) -> [Cout, (i, j, c)] with zero pad to KKp.
    w2 = jnp.transpose(weight.astype(jnp.float32), (0, 2, 3, 1)).reshape(Cout, KK)
    w2 = jnp.pad(w2, ((0, 0), (0, KKp - KK))).astype(cdtype)

    # ---- pass 1: conv + per-tile partial stats --------------------------------
    conv_kernel = _make_conv_kernel(k, s, Th, Wo, Cin, Cout, KK, KKp, TW, cdtype)
    y_t, psum, psumsq = pl.pallas_call(
        conv_kernel,
        out_shape=(
            jax.ShapeDtypeStruct((N, Cout, HW), cdtype),
            jax.ShapeDtypeStruct((N, T, Cout, 1), jnp.float32),
            jax.ShapeDtypeStruct((N, T, Cout, 1), jnp.float32),
        ),
        grid=(N, T),
        in_specs=[
            pl.BlockSpec((1, 1, Tb, Cin, Wp), lambda n, t: (n, t, 0, 0, 0)),
            pl.BlockSpec((1, 1, Hh, Cin, Wp), lambda n, t: (n, t, 0, 0, 0)),
            pl.BlockSpec((Cout, KKp), lambda n, t: (0, 0)),
        ],
        out_specs=(
            pl.BlockSpec((1, Cout, TW), lambda n, t: (n, 0, t)),
            pl.BlockSpec((1, 1, Cout, 1), lambda n, t: (n, t, 0, 0)),
            pl.BlockSpec((1, 1, Cout, 1), lambda n, t: (n, t, 0, 0)),
        ),
        scratch_shapes=[
            pltpu.VMEM((KKp, TW), cdtype),          # im2col slab
            pltpu.VMEM((Cout, TW), jnp.float32),    # f32 matmul accumulator
        ],
        compiler_params=pltpu.CompilerParams(
            # both axes independent (partial stats per tile) -> megacore even for N=1
            dimension_semantics=("parallel", "parallel"),
            vmem_limit_bytes=vmem_limit,
        ),
    )(x_body, x_halo, w2)

    # ---- tiny JAX glue: combine partials into global BN scale/shift ------------
    count = jnp.float32(N * HW)
    ch_sum = jnp.sum(psum, axis=(0, 1, 3))
    ch_sumsq = jnp.sum(psumsq, axis=(0, 1, 3))
    mean = ch_sum / count
    var = jnp.maximum(ch_sumsq / count - mean * mean, 0.0)   # biased var (BN training)
    # TODO(synk): for very large N*Ho*Wo, combine per-tile (count, mean, M2) with
    #             Chan's formula instead of E[x^2]-E[x]^2 to avoid f32 cancellation.
    inv_std = lax.rsqrt(var + eps)
    g32 = gamma.astype(jnp.float32)
    scale = (g32 * inv_std).reshape(Cout, 1)
    shift = (beta.astype(jnp.float32) - mean * g32 * inv_std).reshape(Cout, 1)

    # ---- pass 2: normalize + affine + LeakyReLU (wide lane-dense blocks) -------
    TW2 = _pick_pass2_cols(HW, TW, pass2_cols)
    bn_kernel = _make_bn_act_kernel(float(leaky_slope))
    alias = {0: 0} if cdtype == jnp.float32 else {}   # in-place only when dtypes match
    out_t = pl.pallas_call(
        bn_kernel,
        out_shape=jax.ShapeDtypeStruct((N, Cout, HW), jnp.float32),
        grid=(N, HW // TW2),
        in_specs=[
            pl.BlockSpec((1, Cout, TW2), lambda n, t: (n, 0, t)),
            pl.BlockSpec((Cout, 1), lambda n, t: (0, 0)),
            pl.BlockSpec((Cout, 1), lambda n, t: (0, 0)),
        ],
        out_specs=pl.BlockSpec((1, Cout, TW2), lambda n, t: (n, 0, t)),
        input_output_aliases=alias,
        compiler_params=pltpu.CompilerParams(
            dimension_semantics=("parallel", "parallel"),
            vmem_limit_bytes=vmem_limit,
        ),
    )(y_t, scale, shift)

    # [N, Cout, Ho*Wo] -> NCHW is a free reshape (no transpose pass over the output).
    return out_t.reshape(N, Cout, Ho, Wo)


# ------------------------------ reference ---------------------------------------

def _reference(x, weight, bias, gamma, beta, kernel_size, stride,
               eps=1e-5, leaky_slope=0.2):
    k, s = kernel_size, stride
    pad = (k - s + 1) // 2
    x_pad = jnp.pad(x, ((0, 0), (0, 0), (pad, pad), (pad, pad)), mode="reflect")
    y = lax.conv_general_dilated(
        x_pad, weight, window_strides=(s, s), padding="VALID",
        dimension_numbers=("NCHW", "OIHW", "NCHW"))
    y = y + bias[None, :, None, None]
    mean = y.mean(axis=(0, 2, 3), keepdims=True)
    var = y.var(axis=(0, 2, 3), keepdims=True)          # biased, matches BN training
    y = (y - mean) / jnp.sqrt(var + eps)
    y = y * gamma[None, :, None, None] + beta[None, :, None, None]
    return jnp.where(y >= 0, y, leaky_slope * y)


# -------------------------------- main -------------------------------------------

if __name__ == "__main__":
    def run_case(N, Cin, Cout, H, W, k, s, use_bf16, max_tile_cols, tol, key):
        kx, kw, kb, kg, kbt = jax.random.split(key, 5)
        x = jax.random.normal(kx, (N, Cin, H, W), dtype=jnp.float32)
        weight = 0.1 * jax.random.normal(kw, (Cout, Cin, k, k), dtype=jnp.float32)
        bias = 0.1 * jax.random.normal(kb, (Cout,), dtype=jnp.float32)
        gamma = 1.0 + 0.1 * jax.random.normal(kg, (Cout,), dtype=jnp.float32)
        beta = 0.1 * jax.random.normal(kbt, (Cout,), dtype=jnp.float32)

        fwd = jax.jit(conv_block_forward,
                      static_argnames=("kernel_size", "stride", "eps", "leaky_slope",
                                       "use_bf16", "max_tile_cols"))
        out = fwd(x, weight, bias, gamma, beta, kernel_size=k, stride=s,
                  use_bf16=use_bf16, max_tile_cols=max_tile_cols)
        out = jax.block_until_ready(out)

        ref = _reference(x, weight, bias, gamma, beta, k, s)
        pad = (k - s + 1) // 2
        Ho = (H + 2 * pad - k) // s + 1
        Wo = (W + 2 * pad - k) // s + 1
        assert out.shape == (N, Cout, Ho, Wo), out.shape
        err = float(jnp.max(jnp.abs(out - ref)))
        assert err < tol, (err, tol)

    key = jax.random.PRNGKey(0)
    k1, k2, k3 = jax.random.split(key, 3)

    # f32 path, max_tile_cols=128 forces 2 row tiles per image (body + halo + partial
    # stats stitching is exercised), tight numeric check.
    run_case(2, 4, 8, 16, 16, 3, 1, use_bf16=False, max_tile_cols=128, tol=3e-4, key=k1)
    # bf16 MXU path (f32 accumulation), single tile, looser check.
    run_case(2, 4, 8, 16, 16, 3, 1, use_bf16=True, max_tile_cols=None, tol=1e-1, key=k2)
    # k=5, Cin=3, non-128-aligned Ho*Wo (full-height fallback, TW == HW), f32.
    run_case(1, 3, 16, 12, 12, 5, 1, use_bf16=False, max_tile_cols=None, tol=3e-4, key=k3)

    print("KERNEL_OK")
</pallas_src>

<mosaic_0001>
module attributes {stable_mosaic.version = 11 : i64} {
  func.func @kernel(%arg0: i32, %arg1: i32, %arg2: memref<1x8x256xf32, #tpu.memory_space<vmem>>, %arg3: memref<8x1xf32, #tpu.memory_space<vmem>>, %arg4: memref<8x1xf32, #tpu.memory_space<vmem>>, %arg5: memref<1x8x256xf32, #tpu.memory_space<vmem>>) attributes {dimension_semantics = [#tpu.dimension_semantics<parallel>, #tpu.dimension_semantics<parallel>], iteration_bounds = array<i64: 2, 1>, scalar_prefetch = 0 : i64, scratch_operands = 0 : i64, tpu.core_type = #tpu.core_type<tc>, window_params = [{transform_indices = @transform_0, window_bounds = array<i64: 1, 8, 256>}, {pipeline_mode = #tpu.pipeline_mode<synchronous>, transform_indices = @transform_1, window_bounds = array<i64: 8, 1>}, {pipeline_mode = #tpu.pipeline_mode<synchronous>, transform_indices = @transform_2, window_bounds = array<i64: 8, 1>}, {transform_indices = @transform_3, window_bounds = array<i64: 1, 8, 256>}]} {
    %c0 = arith.constant 0 : index
    %c0_0 = arith.constant 0 : index
    %c0_1 = arith.constant 0 : index
    %0 = vector.load %arg2[%c0, %c0_0, %c0_1] : memref<1x8x256xf32, #tpu.memory_space<vmem>>, vector<1x8x256xf32>
    %1 = vector.shape_cast %0 : vector<1x8x256xf32> to vector<8x256xf32>
    %c0_2 = arith.constant 0 : index
    %c0_3 = arith.constant 0 : index
    %2 = vector.load %arg3[%c0_2, %c0_3] : memref<8x1xf32, #tpu.memory_space<vmem>>, vector<8x1xf32>
    %3 = vector.broadcast %2 : vector<8x1xf32> to vector<8x256xf32>
    %4 = arith.mulf %1, %3 : vector<8x256xf32>
    %c0_4 = arith.constant 0 : index
    %c0_5 = arith.constant 0 : index
    %5 = vector.load %arg4[%c0_4, %c0_5] : memref<8x1xf32, #tpu.memory_space<vmem>>, vector<8x1xf32>
    %6 = vector.broadcast %5 : vector<8x1xf32> to vector<8x256xf32>
    %7 = arith.addf %4, %6 : vector<8x256xf32>
    %cst = arith.constant 0.000000e+00 : f32
    %8 = vector.broadcast %cst : f32 to vector<8x256xf32>
    %9 = arith.cmpf oge, %7, %8 : vector<8x256xf32>
    %cst_6 = arith.constant 2.000000e-01 : f32
    %10 = vector.broadcast %cst_6 : f32 to vector<8x256xf32>
    %11 = arith.mulf %10, %7 : vector<8x256xf32>
    %12 = arith.select %9, %7, %11 : vector<8x256xi1>, vector<8x256xf32>
    %c0_7 = arith.constant 0 : index
    %c0_8 = arith.constant 0 : index
    %c0_9 = arith.constant 0 : index
    %13 = vector.load %arg5[%c0_7, %c0_8, %c0_9] : memref<1x8x256xf32, #tpu.memory_space<vmem>>, vector<1x8x256xf32>
    %14 = vector.shape_cast %13 : vector<1x8x256xf32> to vector<8x256xf32>
    %15 = vector.shape_cast %12 : vector<8x256xf32> to vector<1x8x256xf32>
    tpu.vector_store %arg5[%c0_7, %c0_8, %c0_9], %15 {strides = array<i32>} : memref<1x8x256xf32, #tpu.memory_space<vmem>>, vector<1x8x256xf32>,
    return
  }
  func.func @transform_0(%arg0: i32, %arg1: i32) -> (i32, i32, i32) {
    %c0_i32 = arith.constant 0 : i32
    %c0_i32_0 = arith.constant 0 : i32
    return %arg0, %c0_i32, %arg1 : i32, i32, i32
  }
  func.func @transform_1(%arg0: i32, %arg1: i32) -> (i32, i32) {
    %c0_i32 = arith.constant 0 : i32
    %c0_i32_0 = arith.constant 0 : i32
    %c0_i32_1 = arith.constant 0 : i32
    return %c0_i32, %c0_i32_0 : i32, i32
  }
  func.func @transform_2(%arg0: i32, %arg1: i32) -> (i32, i32) {
    %c0_i32 = arith.constant 0 : i32
    %c0_i32_0 = arith.constant 0 : i32
    %c0_i32_1 = arith.constant 0 : i32
    return %c0_i32, %c0_i32_0 : i32, i32
  }
  func.func @transform_3(%arg0: i32, %arg1: i32) -> (i32, i32, i32) {
    %c0_i32 = arith.constant 0 : i32
    %c0_i32_0 = arith.constant 0 : i32
    return %arg0, %c0_i32, %arg1 : i32, i32, i32
  }
}

module attributes {stable_mosaic.version = 11 : i64} {
  func.func @kernel(%arg0: i32, %arg1: i32, %arg2: memref<1x1x8x4x18xf32, #tpu.memory_space<vmem>>, %arg3: memref<1x1x2x4x18xf32, #tpu.memory_space<vmem>>, %arg4: memref<8x40xf32, #tpu.memory_space<vmem>>, %arg5: memref<1x8x128xf32, #tpu.memory_space<vmem>>, %arg6: memref<1x1x8x1xf32, #tpu.memory_space<vmem>>, %arg7: memref<1x1x8x1xf32, #tpu.memory_space<vmem>>, %arg8: memref<40x128xf32, #tpu.memory_space<vmem>>, %arg9: memref<8x128xf32, #tpu.memory_space<vmem>>) attributes {dimension_semantics = [#tpu.dimension_semantics<parallel>, #tpu.dimension_semantics<parallel>], iteration_bounds = array<i64: 2, 2>, scalar_prefetch = 0 : i64, scratch_operands = 2 : i64, tpu.core_type = #tpu.core_type<tc>, window_params = [{transform_indices = @transform_0, window_bounds = array<i64: 1, 1, 8, 4, 18>}, {transform_indices = @transform_1, window_bounds = array<i64: 1, 1, 2, 4, 18>}, {pipeline_mode = #tpu.pipeline_mode<synchronous>, transform_indices = @transform_2, window_bounds = array<i64: 8, 40>}, {transform_indices = @transform_3, window_bounds = array<i64: 1, 8, 128>}, {transform_indices = @transform_4, window_bounds = array<i64: 1, 1, 8, 1>}, {transform_indices = @transform_5, window_bounds = array<i64: 1, 1, 8, 1>}]} {
    %cst = arith.constant 0.000000e+00 : f32
    %0 = vector.broadcast %cst : f32 to vector<4x128xf32>
    %c36 = arith.constant 36 : index
    %c0 = arith.constant 0 : index
    %1 = vector.load %arg8[%c36, %c0] : memref<40x128xf32, #tpu.memory_space<vmem>>, vector<4x128xf32>
    tpu.vector_store %arg8[%c36, %c0], %0 {strides = array<i32>} : memref<40x128xf32, #tpu.memory_space<vmem>>, vector<4x128xf32>,
    %c0_0 = arith.constant 0 : index
    %c0_1 = arith.constant 0 : index
    %c0_2 = arith.constant 0 : index
    %c0_3 = arith.constant 0 : index
    %c0_4 = arith.constant 0 : index
    %2 = vector.load %arg2[%c0_0, %c0_1, %c0_2, %c0_3, %c0_4] : memref<1x1x8x4x18xf32, #tpu.memory_space<vmem>>, vector<1x1x1x4x18xf32>
    %3 = vector.shape_cast %2 : vector<1x1x1x4x18xf32> to vector<4x18xf32>
    %4 = vector.extract_strided_slice %3 {offsets = [0, 0], sizes = [4, 16], strides = [1, 1]} : vector<4x18xf32> to vector<4x16xf32>
    %c0_5 = arith.constant 0 : index
    %c0_6 = arith.constant 0 : index
    %5 = vector.load %arg8[%c0_5, %c0_6] : memref<40x128xf32, #tpu.memory_space<vmem>>, vector<4x16xf32>
    tpu.vector_store %arg8[%c0_5, %c0_6], %4 {strides = array<i32>} : memref<40x128xf32, #tpu.memory_space<vmem>>, vector<4x16xf32>,
    %6 = vector.extract_strided_slice %3 {offsets = [0, 1], sizes = [4, 16], strides = [1, 1]} : vector<4x18xf32> to vector<4x16xf32>
    %c4 = arith.constant 4 : index
    %c0_7 = arith.constant 0 : index
    %7 = vector.load %arg8[%c4, %c0_7] : memref<40x128xf32, #tpu.memory_space<vmem>>, vector<4x16xf32>
    tpu.vector_store %arg8[%c4, %c0_7], %6 {strides = array<i32>} : memref<40x128xf32, #tpu.memory_space<vmem>>, vector<4x16xf32>,
    %8 = vector.extract_strided_slice %3 {offsets = [0, 2], sizes = [4, 16], strides = [1, 1]} : vector<4x18xf32> to vector<4x16xf32>
    %c8 = arith.constant 8 : index
    %c0_8 = arith.constant 0 : index
    %9 = vector.load %arg8[%c8, %c0_8] : memref<40x128xf32, #tpu.memory_space<vmem>>, vector<4x16xf32>
    tpu.vector_store %arg8[%c8, %c0_8], %8 {strides = array<i32>} : memref<40x128xf32, #tpu.memory_space<vmem>>, vector<4x16xf32>,
    %c0_9 = arith.constant 0 : index
    %c0_10 = arith.constant 0 : index
    %c1 = arith.constant 1 : index
    %c0_11 = arith.constant 0 : index
    %c0_12 = arith.constant 0 : index
    %10 = vector.load %arg2[%c0_9, %c0_10, %c1, %c0_11, %c0_12] : memref<1x1x8x4x18xf32, #tpu.memory_space<vmem>>, vector<1x1x1x4x18xf32>
    %11 = vector.shape_cast %10 : vector<1x1x1x4x18xf32> to vector<4x18xf32>
    %12 = vector.extract_strided_slice %11 {offsets = [0, 0], sizes = [4, 16], strides = [1, 1]} : vector<4x18xf32> to vector<4x16xf32>
    %c0_13 = arith.constant 0 : index
    %c16 = arith.constant 16 : index
    %13 = vector.load %arg8[%c0_13, %c16] : memref<40x128xf32, #tpu.memory_space<vmem>>, vector<4x16xf32>
    tpu.vector_store %arg8[%c0_13, %c16], %12 {strides = array<i32>} : memref<40x128xf32, #tpu.memory_space<vmem>>, vector<4x16xf32>,
    %14 = vector.extract_strided_slice %11 {offsets = [0, 1], sizes = [4, 16], strides = [1, 1]} : vector<4x18xf32> to vector<4x16xf32>
    %c4_14 = arith.constant 4 : index
    %c16_15 = arith.constant 16 : index
    %15 = vector.load %arg8[%c4_14, %c16_15] : memref<40x128xf32, #tpu.memory_space<vmem>>, vector<4x16xf32>
    tpu.vector_store %arg8[%c4_14, %c16_15], %14 {strides = array<i32>} : memref<40x128xf32, #tpu.memory_space<vmem>>, vector<4x16xf32>,
    %16 = vector.extract_strided_slice %11 {offsets = [0, 2], sizes = [4, 16], strides = [1, 1]} : vector<4x18xf32> to vector<4x16xf32>
    %c8_16 = arith.constant 8 : index
    %c16_17 = arith.constant 16 : index
    %17 = vector.load %arg8[%c8_16, %c16_17] : memref<40x128xf32, #tpu.memory_space<vmem>>, vector<4x16xf32>
    tpu.vector_store %arg8[%c8_16, %c16_17], %16 {strides = array<i32>} : memref<40x128xf32, #tpu.memory_space<vmem>>, vector<4x16xf32>,
    %18 = vector.extract_strided_slice %11 {offsets = [0, 0], sizes = [4, 16], strides = [1, 1]} : vector<4x18xf32> to vector<4x16xf32>
    %c12 = arith.constant 12 : index
    %c0_18 = arith.constant 0 : index
    %19 = vector.load %arg8[%c12, %c0_18] : memref<40x128xf32, #tpu.memory_space<vmem>>, vector<4x16xf32>
    tpu.vector_store %arg8[%c12, %c0_18], %18 {strides = array<i32>} : memref<40x128xf32, #tpu.memory_space<vmem>>, vector<4x16xf32>,
    %20 = vector.extract_strided_slice %11 {offsets = [0, 1], sizes = [4, 16], strides = [1, 1]} : vector<4x18xf32> to vector<4x16xf32>
    %c16_19 = arith.constant 16 : index
    %c0_20 = arith.constant 0 : index
    %21 = vector.load %arg8[%c16_19, %c0_20] : memref<40x128xf32, #tpu.memory_space<vmem>>, vector<4x16xf32>
    tpu.vector_store %arg8[%c16_19, %c0_20], %20 {strides = array<i32>} : memref<40x128xf32, #tpu.memory_space<vmem>>, vector<4x16xf32>,
    %22 = vector.extract_strided_slice %11 {offsets = [0, 2], sizes = [4, 16], strides = [1, 1]} : vector<4x18xf32> to vector<4x16xf32>
    %c20 = arith.constant 20 : index
    %c0_21 = arith.constant 0 : index
    %23 = vector.load %arg8[%c20, %c0_21] : memref<40x128xf32, #tpu.memory_space<vmem>>, vector<4x16xf32>
    tpu.vector_store %arg8[%c20, %c0_21], %22 {strides = array<i32>} : memref<40x128xf32, #tpu.memory_space<vmem>>, vector<4x16xf32>,
    %c0_22 = arith.constant 0 : index
    %c0_23 = arith.constant 0 : index
    %c2 = arith.constant 2 : index
    %c0_24 = arith.constant 0 : index
    %c0_25 = arith.constant 0 : index
    %24 = vector.load %arg2[%c0_22, %c0_23, %c2, %c0_24, %c0_25] : memref<1x1x8x4x18xf32, #tpu.memory_space<vmem>>, vector<1x1x1x4x18xf32>
    %25 = vector.shape_cast %24 : vector<1x1x1x4x18xf32> to vector<4x18xf32>
    %26 = vector.extract_strided_slice %25 {offsets = [0, 0], sizes = [4, 16], strides = [1, 1]} : vector<4x18xf32> to vector<4x16xf32>
    %c0_26 = arith.constant 0 : index
    %c32 = arith.constant 32 : index
    %27 = vector.load %arg8[%c0_26, %c32] : memref<40x128xf32, #tpu.memory_space<vmem>>, vector<4x16xf32>
    tpu.vector_store %arg8[%c0_26, %c32], %26 {strides = array<i32>} : memref<40x128xf32, #tpu.memory_space<vmem>>, vector<4x16xf32>,
    %28 = vector.extract_strided_slice %25 {offsets = [0, 1], sizes = [4, 16], strides = [1, 1]} : vector<4x18xf32> to vector<4x16xf32>
    %c4_27 = arith.constant 4 : index
    %c32_28 = arith.constant 32 : index
    %29 = vector.load %arg8[%c4_27, %c32_28] : memref<40x128xf32, #tpu.memory_space<vmem>>, vector<4x16xf32>
    tpu.vector_store %arg8[%c4_27, %c32_28], %28 {strides = array<i32>} : memref<40x128xf32, #tpu.memory_space<vmem>>, vector<4x16xf32>,
    %30 = vector.extract_strided_slice %25 {offsets = [0, 2], sizes = [4, 16], strides = [1, 1]} : vector<4x18xf32> to vector<4x16xf32>
    %c8_29 = arith.constant 8 : index
    %c32_30 = arith.constant 32 : index
    %31 = vector.load %arg8[%c8_29, %c32_30] : memref<40x128xf32, #tpu.memory_space<vmem>>, vector<4x16xf32>
    tpu.vector_store %arg8[%c8_29, %c32_30], %30 {strides = array<i32>} : memref<40x128xf32, #tpu.memory_space<vmem>>, vector<4x16xf32>,
    %32 = vector.extract_strided_slice %25 {offsets = [0, 0], sizes = [4, 16], strides = [1, 1]} : vector<4x18xf32> to vector<4x16xf32>
    %c12_31 = arith.constant 12 : index
    %c16_32 = arith.constant 16 : index
    %33 = vector.load %arg8[%c12_31, %c16_32] : memref<40x128xf32, #tpu.memory_space<vmem>>, vector<4x16xf32>
    tpu.vector_store %arg8[%c12_31, %c16_32], %32 {strides = array<i32>} : memref<40x128xf32, #tpu.memory_space<vmem>>, vector<4x16xf32>,
    %34 = vector.extract_strided_slice %25 {offsets = [0, 1], sizes = [4, 16], strides = [1, 1]} : vector<4x18xf32> to vector<4x16xf32>
    %c16_33 = arith.constant 16 : index
    %c16_34 = arith.constant 16 : index
    %35 = vector.load %arg8[%c16_33, %c16_34] : memref<40x128xf32, #tpu.memory_space<vmem>>, vector<4x16xf32>
    tpu.vector_store %arg8[%c16_33, %c16_34], %34 {strides = array<i32>} : memref<40x128xf32, #tpu.memory_space<vmem>>, vector<4x16xf32>,
    %36 = vector.extract_strided_slice %25 {offsets = [0, 2], sizes = [4, 16], strides = [1, 1]} : vector<4x18xf32> to vector<4x16xf32>
    %c20_35 = arith.constant 20 : index
    %c16_36 = arith.constant 16 : index
    %37 = vector.load %arg8[%c20_35, %c16_36] : memref<40x128xf32, #tpu.memory_space<vmem>>, vector<4x16xf32>
    tpu.vector_store %arg8[%c20_35, %c16_36], %36 {strides = array<i32>} : memref<40x128xf32, #tpu.memory_space<vmem>>, vector<4x16xf32>,
    %38 = vector.extract_strided_slice %25 {offsets = [0, 0], sizes = [4, 16], strides = [1, 1]} : vector<4x18xf32> to vector<4x16xf32>
    %c24 = arith.constant 24 : index
    %c0_37 = arith.constant 0 : index
    %39 = vector.load %arg8[%c24, %c0_37] : memref<40x128xf32, #tpu.memory_space<vmem>>, vector<4x16xf32>
    tpu.vector_store %arg8[%c24, %c0_37], %38 {strides = array<i32>} : memref<40x128xf32, #tpu.memory_space<vmem>>, vector<4x16xf32>,
    %40 = vector.extract_strided_slice %25 {offsets = [0, 1], sizes = [4, 16], strides = [1, 1]} : vector<4x18xf32> to vector<4x16xf32>
    %c28 = arith.constant 28 : index
    %c0_38 = arith.constant 0 : index
    %41 = vector.load %arg8[%c28, %c0_38] : memref<40x128xf32, #tpu.memory_space<vmem>>, vector<4x16xf32>
    tpu.vector_store %arg8[%c28, %c0_38], %40 {strides = array<i32>} : memref<40x128xf32, #tpu.memory_space<vmem>>, vector<4x16xf32>,
    %42 = vector.extract_strided_slice %25 {offsets = [0, 2], sizes = [4, 16], strides = [1, 1]} : vector<4x18xf32> to vector<4x16xf32>
    %c32_39 = arith.constant 32 : index
    %c0_40 = arith.constant 0 : index
    %43 = vector.load %arg8[%c32_39, %c0_40] : memref<40x128xf32, #tpu.memory_space<vmem>>, vector<4x16xf32>
    tpu.vector_store %arg8[%c32_39, %c0_40], %42 {strides = array<i32>} : memref<40x128xf32, #tpu.memory_space<vmem>>, vector<4x16xf32>,
    %c0_41 = arith.constant 0 : index
    %c0_42 = arith.constant 0 : index
    %c3 = arith.constant 3 : index
    %c0_43 = arith.constant 0 : index
    %c0_44 = arith.constant 0 : index
    %44 = vector.load %arg2[%c0_41, %c0_42, %c3, %c0_43, %c0_44] : memref<1x1x8x4x18xf32, #tpu.memory_space<vmem>>, vector<1x1x1x4x18xf32>
    %45 = vector.shape_cast %44 : vector<1x1x1x4x18xf32> to vector<4x18xf32>
    %46 = vector.extract_strided_slice %45 {offsets = [0, 0], sizes = [4, 16], strides = [1, 1]} : vector<4x18xf32> to vector<4x16xf32>
    %c0_45 = arith.constant 0 : index
    %c48 = arith.constant 48 : index
    %47 = vector.load %arg8[%c0_45, %c48] : memref<40x128xf32, #tpu.memory_space<vmem>>, vector<4x16xf32>
    tpu.vector_store %arg8[%c0_45, %c48], %46 {strides = array<i32>} : memref<40x128xf32, #tpu.memory_space<vmem>>, vector<4x16xf32>,
    %48 = vector.extract_strided_slice %45 {offsets = [0, 1], sizes = [4, 16], strides = [1, 1]} : vector<4x18xf32> to vector<4x16xf32>
    %c4_46 = arith.constant 4 : index
    %c48_47 = arith.constant 48 : index
    %49 = vector.load %arg8[%c4_46, %c48_47] : memref<40x128xf32, #tpu.memory_space<vmem>>, vector<4x16xf32>
    tpu.vector_store %arg8[%c4_46, %c48_47], %48 {strides = array<i32>} : memref<40x128xf32, #tpu.memory_space<vmem>>, vector<4x16xf32>,
    %50 = vector.extract_strided_slice %45 {offsets = [0, 2], sizes = [4, 16], strides = [1, 1]} : vector<4x18xf32> to vector<4x16xf32>
    %c8_48 = arith.constant 8 : index
    %c48_49 = arith.constant 48 : index
    %51 = vector.load %arg8[%c8_48, %c48_49] : memref<40x128xf32, #tpu.memory_space<vmem>>, vector<4x16xf32>
    tpu.vector_store %arg8[%c8_48, %c48_49], %50 {strides = array<i32>} : memref<40x128xf32, #tpu.memory_space<vmem>>, vector<4x16xf32>,
    %52 = vector.extract_strided_slice %45 {offsets = [0, 0], sizes = [4, 16], strides = [1, 1]} : vector<4x18xf32> to vector<4x16xf32>
    %c12_50 = arith.constant 12 : index
    %c32_51 = arith.constant 32 : index
    %53 = vector.load %arg8[%c12_50, %c32_51] : memref<40x128xf32, #tpu.memory_space<vmem>>, vector<4x16xf32>
    tpu.vector_store %arg8[%c12_50, %c32_51], %52 {strides = array<i32>} : memref<40x128xf32, #tpu.memory_space<vmem>>, vector<4x16xf32>,
    %54 = vector.extract_strided_slice %45 {offsets = [0, 1], sizes = [4, 16], strides = [1, 1]} : vector<4x18xf32> to vector<4x16xf32>
    %c16_52 = arith.constant 16 : index
    %c32_53 = arith.constant 32 : index
    %55 = vector.load %arg8[%c16_52, %c32_53] : memref<40x128xf32, #tpu.memory_space<vmem>>, vector<4x16xf32>
    tpu.vector_store %arg8[%c16_52, %c32_53], %54 {strides = array<i32>} : memref<40x128xf32, #tpu.memory_space<vmem>>, vector<4x16xf32>,
    %56 = vector.extract_strided_slice %45 {offsets = [0, 2], sizes = [4, 16], strides = [1, 1]} : vector<4x18xf32> to vector<4x16xf32>
    %c20_54 = arith.constant 20 : index
    %c32_55 = arith.constant 32 : index
    %57 = vector.load %arg8[%c20_54, %c32_55] : memref<40x128xf32, #tpu.memory_space<vmem>>, vector<4x16xf32>
    tpu.vector_store %arg8[%c20_54, %c32_55], %56 {strides = array<i32>} : memref<40x128xf32, #tpu.memory_space<vmem>>, vector<4x16xf32>,
    %58 = vector.extract_strided_slice %45 {offsets = [0, 0], sizes = [4, 16], strides = [1, 1]} : vector<4x18xf32> to vector<4x16xf32>
    %c24_56 = arith.constant 24 : index
    %c16_57 = arith.constant 16 : index
    %59 = vector.load %arg8[%c24_56, %c16_57] : memref<40x128xf32, #tpu.memory_space<vmem>>, vector<4x16xf32>
    tpu.vector_store %arg8[%c24_56, %c16_57], %58 {strides = array<i32>} : memref<40x128xf32, #tpu.memory_space<vmem>>, vector<4x16xf32>,
    %60 = vector.extract_strided_slice %45 {offsets = [0, 1], sizes = [4, 16], strides = [1, 1]} : vector<4x18xf32> to vector<4x16xf32>
    %c28_58 = arith.constant 28 : index
    %c16_59 = arith.constant 16 : index
    %61 = vector.load %arg8[%c28_58, %c16_59] : memref<40x128xf32, #tpu.memory_space<vmem>>, vector<4x16xf32>
    tpu.vector_store %arg8[%c28_58, %c16_59], %60 {strides = array<i32>} : memref<40x128xf32, #tpu.memory_space<vmem>>, vector<4x16xf32>,
    %62 = vector.extract_strided_slice %45 {offsets = [0, 2], sizes = [4, 16], strides = [1, 1]} : vector<4x18xf32> to vector<4x16xf32>
    %c32_60 = arith.constant 32 : index
    %c16_61 = arith.constant 16 : index
    %63 = vector.load %arg8[%c32_60, %c16_61] : memref<40x128xf32, #tpu.memory_space<vmem>>, vector<4x16xf32>
    tpu.vector_store %arg8[%c32_60, %c16_61], %62 {strides = array<i32>} : memref<40x128xf32, #tpu.memory_space<vmem>>, vector<4x16xf32>,
    %c0_62 = arith.constant 0 : index
    %c0_63 = arith.constant 0 : index
    %c4_64 = arith.constant 4 : index
    %c0_65 = arith.constant 0 : index
    %c0_66 = arith.constant 0 : index
    %64 = vector.load %arg2[%c0_62, %c0_63, %c4_64, %c0_65, %c0_66] : memref<1x1x8x4x18xf32, #tpu.memory_space<vmem>>, vector<1x1x1x4x18xf32>
    %65 = vector.shape_cast %64 : vector<1x1x1x4x18xf32> to vector<4x18xf32>
    %66 = vector.extract_strided_slice %65 {offsets = [0, 0], sizes = [4, 16], strides = [1, 1]} : vector<4x18xf32> to vector<4x16xf32>
    %c0_67 = arith.constant 0 : index
    %c64 = arith.constant 64 : index
    %67 = vector.load %arg8[%c0_67, %c64] : memref<40x128xf32, #tpu.memory_space<vmem>>, vector<4x16xf32>
    tpu.vector_store %arg8[%c0_67, %c64], %66 {strides = array<i32>} : memref<40x128xf32, #tpu.memory_space<vmem>>, vector<4x16xf32>,
    %68 = vector.extract_strided_slice %65 {offsets = [0, 1], sizes = [4, 16], strides = [1, 1]} : vector<4x18xf32> to vector<4x16xf32>
    %c4_68 = arith.constant 4 : index
    %c64_69 = arith.constant 64 : index
    %69 = vector.load %arg8[%c4_68, %c64_69] : memref<40x128xf32, #tpu.memory_space<vmem>>, vector<4x16xf32>
    tpu.vector_store %arg8[%c4_68, %c64_69], %68 {strides = array<i32>} : memref<40x128xf32, #tpu.memory_space<vmem>>, vector<4x16xf32>,
    %70 = vector.extract_strided_slice %65 {offsets = [0, 2], sizes = [4, 16], strides = [1, 1]} : vector<4x18xf32> to vector<4x16xf32>
    %c8_70 = arith.constant 8 : index
    %c64_71 = arith.constant 64 : index
    %71 = vector.load %arg8[%c8_70, %c64_71] : memref<40x128xf32, #tpu.memory_space<vmem>>, vector<4x16xf32>
    tpu.vector_store %arg8[%c8_70, %c64_71], %70 {strides = array<i32>} : memref<40x128xf32, #tpu.memory_space<vmem>>, vector<4x16xf32>,
    %72 = vector.extract_strided_slice %65 {offsets = [0, 0], sizes = [4, 16], strides = [1, 1]} : vector<4x18xf32> to vector<4x16xf32>
    %c12_72 = arith.constant 12 : index
    %c48_73 = arith.constant 48 : index
    %73 = vector.load %arg8[%c12_72, %c48_73] : memref<40x128xf32, #tpu.memory_space<vmem>>, vector<4x16xf32>
    tpu.vector_store %arg8[%c12_72, %c48_73], %72 {strides = array<i32>} : memref<40x128xf32, #tpu.memory_space<vmem>>, vector<4x16xf32>,
    %74 = vector.extract_strided_slice %65 {offsets = [0, 1], sizes = [4, 16], strides = [1, 1]} : vector<4x18xf32> to vector<4x16xf32>
    %c16_74 = arith.constant 16 : index
    %c48_75 = arith.constant 48 : index
    %75 = vector.load %arg8[%c16_74, %c48_75] : memref<40x128xf32, #tpu.memory_space<vmem>>, vector<4x16xf32>
    tpu.vector_store %arg8[%c16_74, %c48_75], %74 {strides = array<i32>} : memref<40x128xf32, #tpu.memory_space<vmem>>, vector<4x16xf32>,
    %76 = vector.extract_strided_slice %65 {offsets = [0, 2], sizes = [4, 16], strides = [1, 1]} : vector<4x18xf32> to vector<4x16xf32>
    %c20_76 = arith.constant 20 : index
    %c48_77 = arith.constant 48 : index
    %77 = vector.load %arg8[%c20_76, %c48_77] : memref<40x128xf32, #tpu.memory_space<vmem>>, vector<4x16xf32>
    tpu.vector_store %arg8[%c20_76, %c48_77], %76 {strides = array<i32>} : memref<40x128xf32, #tpu.memory_space<vmem>>, vector<4x16xf32>,
    %78 = vector.extract_strided_slice %65 {offsets = [0, 0], sizes = [4, 16], strides = [1, 1]} : vector<4x18xf32> to vector<4x16xf32>
    %c24_78 = arith.constant 24 : index
    %c32_79 = arith.constant 32 : index
    %79 = vector.load %arg8[%c24_78, %c32_79] : memref<40x128xf32, #tpu.memory_space<vmem>>, vector<4x16xf32>
    tpu.vector_store %arg8[%c24_78, %c32_79], %78 {strides = array<i32>} : memref<40x128xf32, #tpu.memory_space<vmem>>, vector<4x16xf32>,
    %80 = vector.extract_strided_slice %65 {offsets = [0, 1], sizes = [4, 16], strides = [1, 1]} : vector<4x18xf32> to vector<4x16xf32>
    %c28_80 = arith.constant 28 : index
    %c32_81 = arith.constant 32 : index
    %81 = vector.load %arg8[%c28_80, %c32_81] : memref<40x128xf32, #tpu.memory_space<vmem>>, vector<4x16xf32>
    tpu.vector_store %arg8[%c28_80, %c32_81], %80 {strides = array<i32>} : memref<40x128xf32, #tpu.memory_space<vmem>>, vector<4x16xf32>,
    %82 = vector.extract_strided_slice %65 {offsets = [0, 2], sizes = [4, 16], strides = [1, 1]} : vector<4x18xf32> to vector<4x16xf32>
    %c32_82 = arith.constant 32 : index
    %c32_83 = arith.constant 32 : index
    %83 = vector.load %arg8[%c32_82, %c32_83] : memref<40x128xf32, #tpu.memory_space<vmem>>, vector<4x16xf32>
    tpu.vector_store %arg8[%c32_82, %c32_83], %82 {strides = array<i32>} : memref<40x128xf32, #tpu.memory_space<vmem>>, vector<4x16xf32>,
    %c0_84 = arith.constant 0 : index
    %c0_85 = arith.constant 0 : index
    %c5 = arith.constant 5 : index
    %c0_86 = arith.constant 0 : index
    %c0_87 = arith.constant 0 : index
    %84 = vector.load %arg2[%c0_84, %c0_85, %c5, %c0_86, %c0_87] : memref<1x1x8x4x18xf32, #tpu.memory_space<vmem>>, vector<1x1x1x4x18xf32>
    %85 = vector.shape_cast %84 : vector<1x1x1x4x18xf32> to vector<4x18xf32>
    %86 = vector.extract_strided_slice %85 {offsets = [0, 0], sizes = [4, 16], strides = [1, 1]} : vector<4x18xf32> to vector<4x16xf32>
    %c0_88 = arith.constant 0 : index
    %c80 = arith.constant 80 : index
    %87 = vector.load %arg8[%c0_88, %c80] : memref<40x128xf32, #tpu.memory_space<vmem>>, vector<4x16xf32>
    tpu.vector_store %arg8[%c0_88, %c80], %86 {strides = array<i32>} : memref<40x128xf32, #tpu.memory_space<vmem>>, vector<4x16xf32>,
    %88 = vector.extract_strided_slice %85 {offsets = [0, 1], sizes = [4, 16], strides = [1, 1]} : vector<4x18xf32> to vector<4x16xf32>
    %c4_89 = arith.constant 4 : index
    %c80_90 = arith.constant 80 : index
    %89 = vector.load %arg8[%c4_89, %c80_90] : memref<40x128xf32, #tpu.memory_space<vmem>>, vector<4x16xf32>
    tpu.vector_store %arg8[%c4_89, %c80_90], %88 {strides = array<i32>} : memref<40x128xf32, #tpu.memory_space<vmem>>, vector<4x16xf32>,
    %90 = vector.extract_strided_slice %85 {offsets = [0, 2], sizes = [4, 16], strides = [1, 1]} : vector<4x18xf32> to vector<4x16xf32>
    %c8_91 = arith.constant 8 : index
    %c80_92 = arith.constant 80 : index
    %91 = vector.load %arg8[%c8_91, %c80_92] : memref<40x128xf32, #tpu.memory_space<vmem>>, vector<4x16xf32>
    tpu.vector_store %arg8[%c8_91, %c80_92], %90 {strides = array<i32>} : memref<40x128xf32, #tpu.memory_space<vmem>>, vector<4x16xf32>,
    %92 = vector.extract_strided_slice %85 {offsets = [0, 0], sizes = [4, 16], strides = [1, 1]} : vector<4x18xf32> to vector<4x16xf32>
    %c12_93 = arith.constant 12 : index
    %c64_94 = arith.constant 64 : index
    %93 = vector.load %arg8[%c12_93, %c64_94] : memref<40x128xf32, #tpu.memory_space<vmem>>, vector<4x16xf32>
    tpu.vector_store %arg8[%c12_93, %c64_94], %92 {strides = array<i32>} : memref<40x128xf32, #tpu.memory_space<vmem>>, vector<4x16xf32>,
    %94 = vector.extract_strided_slice %85 {offsets = [0, 1], sizes = [4, 16], strides = [1, 1]} : vector<4x18xf32> to vector<4x16xf32>
    %c16_95 = arith.constant 16 : index
    %c64_96 = arith.constant 64 : index
    %95 = vector.load %arg8[%c16_95, %c64_96] : memref<40x128xf32, #tpu.memory_space<vmem>>, vector<4x16xf32>
    tpu.vector_store %arg8[%c16_95, %c64_96], %94 {strides = array<i32>} : memref<40x128xf32, #tpu.memory_space<vmem>>, vector<4x16xf32>,
    %96 = vector.extract_strided_slice %85 {offsets = [0, 2], sizes = [4, 16], strides = [1, 1]} : vector<4x18xf32> to vector<4x16xf32>
    %c20_97 = arith.constant 20 : index
    %c64_98 = arith.constant 64 : index
    %97 = vector.load %arg8[%c20_97, %c64_98] : memref<40x128xf32, #tpu.memory_space<vmem>>, vector<4x16xf32>
    tpu.vector_store %arg8[%c20_97, %c64_98], %96 {strides = array<i32>} : memref<40x128xf32, #tpu.memory_space<vmem>>, vector<4x16xf32>,
    %98 = vector.extract_strided_slice %85 {offsets = [0, 0], sizes = [4, 16], strides = [1, 1]} : vector<4x18xf32> to vector<4x16xf32>
    %c24_99 = arith.constant 24 : index
    %c48_100 = arith.constant 48 : index
    %99 = vector.load %arg8[%c24_99, %c48_100] : memref<40x128xf32, #tpu.memory_space<vmem>>, vector<4x16xf32>
    tpu.vector_store %arg8[%c24_99, %c48_100], %98 {strides = array<i32>} : memref<40x128xf32, #tpu.memory_space<vmem>>, vector<4x16xf32>,
    %100 = vector.extract_strided_slice %85 {offsets = [0, 1], sizes = [4, 16], strides = [1, 1]} : vector<4x18xf32> to vector<4x16xf32>
    %c28_101 = arith.constant 28 : index
    %c48_102 = arith.constant 48 : index
    %101 = vector.load %arg8[%c28_101, %c48_102] : memref<40x128xf32, #tpu.memory_space<vmem>>, vector<4x16xf32>
    tpu.vector_store %arg8[%c28_101, %c48_102], %100 {strides = array<i32>} : memref<40x128xf32, #tpu.memory_space<vmem>>, vector<4x16xf32>,
    %102 = vector.extract_strided_slice %85 {offsets = [0, 2], sizes = [4, 16], strides = [1, 1]} : vector<4x18xf32> to vector<4x16xf32>
    %c32_103 = arith.constant 32 : index
    %c48_104 = arith.constant 48 : index
    %103 = vector.load %arg8[%c32_103, %c48_104] : memref<40x128xf32, #tpu.memory_space<vmem>>, vector<4x16xf32>
    tpu.vector_store %arg8[%c32_103, %c48_104], %102 {strides = array<i32>} : memref<40x128xf32, #tpu.memory_space<vmem>>, vector<4x16xf32>,
    %c0_105 = arith.constant 0 : index
    %c0_106 = arith.constant 0 : index
    %c6 = arith.constant 6 : index
    %c0_107 = arith.constant 0 : index
    %c0_108 = arith.constant 0 : index
    %104 = vector.load %arg2[%c0_105, %c0_106, %c6, %c0_107, %c0_108] : memref<1x1x8x4x18xf32, #tpu.memory_space<vmem>>, vector<1x1x1x4x18xf32>
    %105 = vector.shape_cast %104 : vector<1x1x1x4x18xf32> to vector<4x18xf32>
    %106 = vector.extract_strided_slice %105 {offsets = [0, 0], sizes = [4, 16], strides = [1, 1]} : vector<4x18xf32> to vector<4x16xf32>
    %c0_109 = arith.constant 0 : index
    %c96 = arith.constant 96 : index
    %107 = vector.load %arg8[%c0_109, %c96] : memref<40x128xf32, #tpu.memory_space<vmem>>, vector<4x16xf32>
    tpu.vector_store %arg8[%c0_109, %c96], %106 {strides = array<i32>} : memref<40x128xf32, #tpu.memory_space<vmem>>, vector<4x16xf32>,
    %108 = vector.extract_strided_slice %105 {offsets = [0, 1], sizes = [4, 16], strides = [1, 1]} : vector<4x18xf32> to vector<4x16xf32>
    %c4_110 = arith.constant 4 : index
    %c96_111 = arith.constant 96 : index
    %109 = vector.load %arg8[%c4_110, %c96_111] : memref<40x128xf32, #tpu.memory_space<vmem>>, vector<4x16xf32>
    tpu.vector_store %arg8[%c4_110, %c96_111], %108 {strides = array<i32>} : memref<40x128xf32, #tpu.memory_space<vmem>>, vector<4x16xf32>,
    %110 = vector.extract_strided_slice %105 {offsets = [0, 2], sizes = [4, 16], strides = [1, 1]} : vector<4x18xf32> to vector<4x16xf32>
    %c8_112 = arith.constant 8 : index
    %c96_113 = arith.constant 96 : index
    %111 = vector.load %arg8[%c8_112, %c96_113] : memref<40x128xf32, #tpu.memory_space<vmem>>, vector<4x16xf32>
    tpu.vector_store %arg8[%c8_112, %c96_113], %110 {strides = array<i32>} : memref<40x128xf32, #tpu.memory_space<vmem>>, vector<4x16xf32>,
    %112 = vector.extract_strided_slice %105 {offsets = [0, 0], sizes = [4, 16], strides = [1, 1]} : vector<4x18xf32> to vector<4x16xf32>
    %c12_114 = arith.constant 12 : index
    %c80_115 = arith.constant 80 : index
    %113 = vector.load %arg8[%c12_114, %c80_115] : memref<40x128xf32, #tpu.memory_space<vmem>>, vector<4x16xf32>
    tpu.vector_store %arg8[%c12_114, %c80_115], %112 {strides = array<i32>} : memref<40x128xf32, #tpu.memory_space<vmem>>, vector<4x16xf32>,
    %114 = vector.extract_strided_slice %105 {offsets = [0, 1], sizes = [4, 16], strides = [1, 1]} : vector<4x18xf32> to vector<4x16xf32>
    %c16_116 = arith.constant 16 : index
    %c80_117 = arith.constant 80 : index
    %115 = vector.load %arg8[%c16_116, %c80_117] : memref<40x128xf32, #tpu.memory_space<vmem>>, vector<4x16xf32>
    tpu.vector_store %arg8[%c16_116, %c80_117], %114 {strides = array<i32>} : memref<40x128xf32, #tpu.memory_space<vmem>>, vector<4x16xf32>,
    %116 = vector.extract_strided_slice %105 {offsets = [0, 2], sizes = [4, 16], strides = [1, 1]} : vector<4x18xf32> to vector<4x16xf32>
    %c20_118 = arith.constant 20 : index
    %c80_119 = arith.constant 80 : index
    %117 = vector.load %arg8[%c20_118, %c80_119] : memref<40x128xf32, #tpu.memory_space<vmem>>, vector<4x16xf32>
    tpu.vector_store %arg8[%c20_118, %c80_119], %116 {strides = array<i32>} : memref<40x128xf32, #tpu.memory_space<vmem>>, vector<4x16xf32>,
    %118 = vector.extract_strided_slice %105 {offsets = [0, 0], sizes = [4, 16], strides = [1, 1]} : vector<4x18xf32> to vector<4x16xf32>
    %c24_120 = arith.constant 24 : index
    %c64_121 = arith.constant 64 : index
    %119 = vector.load %arg8[%c24_120, %c64_121] : memref<40x128xf32, #tpu.memory_space<vmem>>, vector<4x16xf32>
    tpu.vector_store %arg8[%c24_120, %c64_121], %118 {strides = array<i32>} : memref<40x128xf32, #tpu.memory_space<vmem>>, vector<4x16xf32>,
    %120 = vector.extract_strided_slice %105 {offsets = [0, 1], sizes = [4, 16], strides = [1, 1]} : vector<4x18xf32> to vector<4x16xf32>
    %c28_122 = arith.constant 28 : index
    %c64_123 = arith.constant 64 : index
    %121 = vector.load %arg8[%c28_122, %c64_123] : memref<40x128xf32, #tpu.memory_space<vmem>>, vector<4x16xf32>
    tpu.vector_store %arg8[%c28_122, %c64_123], %120 {strides = array<i32>} : memref<40x128xf32, #tpu.memory_space<vmem>>, vector<4x16xf32>,
    %122 = vector.extract_strided_slice %105 {offsets = [0, 2], sizes = [4, 16], strides = [1, 1]} : vector<4x18xf32> to vector<4x16xf32>
    %c32_124 = arith.constant 32 : index
    %c64_125 = arith.constant 64 : index
    %123 = vector.load %arg8[%c32_124, %c64_125] : memref<40x128xf32, #tpu.memory_space<vmem>>, vector<4x16xf32>
    tpu.vector_store %arg8[%c32_124, %c64_125], %122 {strides = array<i32>} : memref<40x128xf32, #tpu.memory_space<vmem>>, vector<4x16xf32>,
    %c0_126 = arith.constant 0 : index
    %c0_127 = arith.constant 0 : index
    %c7 = arith.constant 7 : index
    %c0_128 = arith.constant 0 : index
    %c0_129 = arith.constant 0 : index
    %124 = vector.load %arg2[%c0_126, %c0_127, %c7, %c0_128, %c0_129] : memref<1x1x8x4x18xf32, #tpu.memory_space<vmem>>, vector<1x1x1x4x18xf32>
    %125 = vector.shape_cast %124 : vector<1x1x1x4x18xf32> to vector<4x18xf32>
    %126 = vector.extract_strided_slice %125 {offsets = [0, 0], sizes = [4, 16], strides = [1, 1]} : vector<4x18xf32> to vector<4x16xf32>
    %c0_130 = arith.constant 0 : index
    %c112 = arith.constant 112 : index
    %127 = vector.load %arg8[%c0_130, %c112] : memref<40x128xf32, #tpu.memory_space<vmem>>, vector<4x16xf32>
    tpu.vector_store %arg8[%c0_130, %c112], %126 {strides = array<i32>} : memref<40x128xf32, #tpu.memory_space<vmem>>, vector<4x16xf32>,
    %128 = vector.extract_strided_slice %125 {offsets = [0, 1], sizes = [4, 16], strides = [1, 1]} : vector<4x18xf32> to vector<4x16xf32>
    %c4_131 = arith.constant 4 : index
    %c112_132 = arith.constant 112 : index
    %129 = vector.load %arg8[%c4_131, %c112_132] : memref<40x128xf32, #tpu.memory_space<vmem>>, vector<4x16xf32>
    tpu.vector_store %arg8[%c4_131, %c112_132], %128 {strides = array<i32>} : memref<40x128xf32, #tpu.memory_space<vmem>>, vector<4x16xf32>,
    %130 = vector.extract_strided_slice %125 {offsets = [0, 2], sizes = [4, 16], strides = [1, 1]} : vector<4x18xf32> to vector<4x16xf32>
    %c8_133 = arith.constant 8 : index
    %c112_134 = arith.constant 112 : index
    %131 = vector.load %arg8[%c8_133, %c112_134] : memref<40x128xf32, #tpu.memory_space<vmem>>, vector<4x16xf32>
    tpu.vector_store %arg8[%c8_133, %c112_134], %130 {strides = array<i32>} : memref<40x128xf32, #tpu.memory_space<vmem>>, vector<4x16xf32>,
    %132 = vector.extract_strided_slice %125 {offsets = [0, 0], sizes = [4, 16], strides = [1, 1]} : vector<4x18xf32> to vector<4x16xf32>
    %c12_135 = arith.constant 12 : index
    %c96_136 = arith.constant 96 : index
    %133 = vector.load %arg8[%c12_135, %c96_136] : memref<40x128xf32, #tpu.memory_space<vmem>>, vector<4x16xf32>
    tpu.vector_store %arg8[%c12_135, %c96_136], %132 {strides = array<i32>} : memref<40x128xf32, #tpu.memory_space<vmem>>, vector<4x16xf32>,
    %134 = vector.extract_strided_slice %125 {offsets = [0, 1], sizes = [4, 16], strides = [1, 1]} : vector<4x18xf32> to vector<4x16xf32>
    %c16_137 = arith.constant 16 : index
    %c96_138 = arith.constant 96 : index
    %135 = vector.load %arg8[%c16_137, %c96_138] : memref<40x128xf32, #tpu.memory_space<vmem>>, vector<4x16xf32>
    tpu.vector_store %arg8[%c16_137, %c96_138], %134 {strides = array<i32>} : memref<40x128xf32, #tpu.memory_space<vmem>>, vector<4x16xf32>,
    %136 = vector.extract_strided_slice %125 {offsets = [0, 2], sizes = [4, 16], strides = [1, 1]} : vector<4x18xf32> to vector<4x16xf32>
    %c20_139 = arith.constant 20 : index
    %c96_140 = arith.constant 96 : index
    %137 = vector.load %arg8[%c20_139, %c96_140] : memref<40x128xf32, #tpu.memory_space<vmem>>, vector<4x16xf32>
    tpu.vector_store %arg8[%c20_139, %c96_140], %136 {strides = array<i32>} : memref<40x128xf32, #tpu.memory_space<vmem>>, vector<4x16xf32>,
    %138 = vector.extract_strided_slice %125 {offsets = [0, 0], sizes = [4, 16], strides = [1, 1]} : vector<4x18xf32> to vector<4x16xf32>
    %c24_141 = arith.constant 24 : index
    %c80_142 = arith.constant 80 : index
    %139 = vector.load %arg8[%c24_141, %c80_142] : memref<40x128xf32, #tpu.memory_space<vmem>>, vector<4x16xf32>
    tpu.vector_store %arg8[%c24_141, %c80_142], %138 {strides = array<i32>} : memref<40x128xf32, #tpu.memory_space<vmem>>, vector<4x16xf32>,
    %140 = vector.extract_strided_slice %125 {offsets = [0, 1], sizes = [4, 16], strides = [1, 1]} : vector<4x18xf32> to vector<4x16xf32>
    %c28_143 = arith.constant 28 : index
    %c80_144 = arith.constant 80 : index
    %141 = vector.load %arg8[%c28_143, %c80_144] : memref<40x128xf32, #tpu.memory_space<vmem>>, vector<4x16xf32>
    tpu.vector_store %arg8[%c28_143, %c80_144], %140 {strides = array<i32>} : memref<40x128xf32, #tpu.memory_space<vmem>>, vector<4x16xf32>,
    %142 = vector.extract_strided_slice %125 {offsets = [0, 2], sizes = [4, 16], strides = [1, 1]} : vector<4x18xf32> to vector<4x16xf32>
    %c32_145 = arith.constant 32 : index
    %c80_146 = arith.constant 80 : index
    %143 = vector.load %arg8[%c32_145, %c80_146] : memref<40x128xf32, #tpu.memory_space<vmem>>, vector<4x16xf32>
    tpu.vector_store %arg8[%c32_145, %c80_146], %142 {strides = array<i32>} : memref<40x128xf32, #tpu.memory_space<vmem>>, vector<4x16xf32>,
    %c0_147 = arith.constant 0 : index
    %c0_148 = arith.constant 0 : index
    %c0_149 = arith.constant 0 : index
    %c0_150 = arith.constant 0 : index
    %c0_151 = arith.constant 0 : index
    %144 = vector.load %arg3[%c0_147, %c0_148, %c0_149, %c0_150, %c0_151] : memref<1x1x2x4x18xf32, #tpu.memory_space<vmem>>, vector<1x1x1x4x18xf32>
    %145 = vector.shape_cast %144 : vector<1x1x1x4x18xf32> to vector<4x18xf32>
    %146 = vector.extract_strided_slice %145 {offsets = [0, 0], sizes = [4, 16], strides = [1, 1]} : vector<4x18xf32> to vector<4x16xf32>
    %c12_152 = arith.constant 12 : index
    %c112_153 = arith.constant 112 : index
    %147 = vector.load %arg8[%c12_152, %c112_153] : memref<40x128xf32, #tpu.memory_space<vmem>>, vector<4x16xf32>
    tpu.vector_store %arg8[%c12_152, %c112_153], %146 {strides = array<i32>} : memref<40x128xf32, #tpu.memory_space<vmem>>, vector<4x16xf32>,
    %148 = vector.extract_strided_slice %145 {offsets = [0, 1], sizes = [4, 16], strides = [1, 1]} : vector<4x18xf32> to vector<4x16xf32>
    %c16_154 = arith.constant 16 : index
    %c112_155 = arith.constant 112 : index
    %149 = vector.load %arg8[%c16_154, %c112_155] : memref<40x128xf32, #tpu.memory_space<vmem>>, vector<4x16xf32>
    tpu.vector_store %arg8[%c16_154, %c112_155], %148 {strides = array<i32>} : memref<40x128xf32, #tpu.memory_space<vmem>>, vector<4x16xf32>,
    %150 = vector.extract_strided_slice %145 {offsets = [0, 2], sizes = [4, 16], strides = [1, 1]} : vector<4x18xf32> to vector<4x16xf32>
    %c20_156 = arith.constant 20 : index
    %c112_157 = arith.constant 112 : index
    %151 = vector.load %arg8[%c20_156, %c112_157] : memref<40x128xf32, #tpu.memory_space<vmem>>, vector<4x16xf32>
    tpu.vector_store %arg8[%c20_156, %c112_157], %150 {strides = array<i32>} : memref<40x128xf32, #tpu.memory_space<vmem>>, vector<4x16xf32>,
    %152 = vector.extract_strided_slice %145 {offsets = [0, 0], sizes = [4, 16], strides = [1, 1]} : vector<4x18xf32> to vector<4x16xf32>
    %c24_158 = arith.constant 24 : index
    %c96_159 = arith.constant 96 : index
    %153 = vector.load %arg8[%c24_158, %c96_159] : memref<40x128xf32, #tpu.memory_space<vmem>>, vector<4x16xf32>
    tpu.vector_store %arg8[%c24_158, %c96_159], %152 {strides = array<i32>} : memref<40x128xf32, #tpu.memory_space<vmem>>, vector<4x16xf32>,
    %154 = vector.extract_strided_slice %145 {offsets = [0, 1], sizes = [4, 16], strides = [1, 1]} : vector<4x18xf32> to vector<4x16xf32>
    %c28_160 = arith.constant 28 : index
    %c96_161 = arith.constant 96 : index
    %155 = vector.load %arg8[%c28_160, %c96_161] : memref<40x128xf32, #tpu.memory_space<vmem>>, vector<4x16xf32>
    tpu.vector_store %arg8[%c28_160, %c96_161], %154 {strides = array<i32>} : memref<40x128xf32, #tpu.memory_space<vmem>>, vector<4x16xf32>,
    %156 = vector.extract_strided_slice %145 {offsets = [0, 2], sizes = [4, 16], strides = [1, 1]} : vector<4x18xf32> to vector<4x16xf32>
    %c32_162 = arith.constant 32 : index
    %c96_163 = arith.constant 96 : index
    %157 = vector.load %arg8[%c32_162, %c96_163] : memref<40x128xf32, #tpu.memory_space<vmem>>, vector<4x16xf32>
    tpu.vector_store %arg8[%c32_162, %c96_163], %156 {strides = array<i32>} : memref<40x128xf32, #tpu.memory_space<vmem>>, vector<4x16xf32>,
    %c0_164 = arith.constant 0 : index
    %c0_165 = arith.constant 0 : index
    %c1_166 = arith.constant 1 : index
    %c0_167 = arith.constant 0 : index
    %c0_168 = arith.constant 0 : index
    %158 = vector.load %arg3[%c0_164, %c0_165, %c1_166, %c0_167, %c0_168] : memref<1x1x2x4x18xf32, #tpu.memory_space<vmem>>, vector<1x1x1x4x18xf32>
    %159 = vector.shape_cast %158 : vector<1x1x1x4x18xf32> to vector<4x18xf32>
    %160 = vector.extract_strided_slice %159 {offsets = [0, 0], sizes = [4, 16], strides = [1, 1]} : vector<4x18xf32> to vector<4x16xf32>
    %c24_169 = arith.constant 24 : index
    %c112_170 = arith.constant 112 : index
    %161 = vector.load %arg8[%c24_169, %c112_170] : memref<40x128xf32, #tpu.memory_space<vmem>>, vector<4x16xf32>
    tpu.vector_store %arg8[%c24_169, %c112_170], %160 {strides = array<i32>} : memref<40x128xf32, #tpu.memory_space<vmem>>, vector<4x16xf32>,
    %162 = vector.extract_strided_slice %159 {offsets = [0, 1], sizes = [4, 16], strides = [1, 1]} : vector<4x18xf32> to vector<4x16xf32>
    %c28_171 = arith.constant 28 : index
    %c112_172 = arith.constant 112 : index
    %163 = vector.load %arg8[%c28_171, %c112_172] : memref<40x128xf32, #tpu.memory_space<vmem>>, vector<4x16xf32>
    tpu.vector_store %arg8[%c28_171, %c112_172], %162 {strides = array<i32>} : memref<40x128xf32, #tpu.memory_space<vmem>>, vector<4x16xf32>,
    %164 = vector.extract_strided_slice %159 {offsets = [0, 2], sizes = [4, 16], strides = [1, 1]} : vector<4x18xf32> to vector<4x16xf32>
    %c32_173 = arith.constant 32 : index
    %c112_174 = arith.constant 112 : index
    %165 = vector.load %arg8[%c32_173, %c112_174] : memref<40x128xf32, #tpu.memory_space<vmem>>, vector<4x16xf32>
    tpu.vector_store %arg8[%c32_173, %c112_174], %164 {strides = array<i32>} : memref<40x128xf32, #tpu.memory_space<vmem>>, vector<4x16xf32>,
    %c0_175 = arith.constant 0 : index
    %c0_176 = arith.constant 0 : index
    %166 = vector.load %arg4[%c0_175, %c0_176] : memref<8x40xf32, #tpu.memory_space<vmem>>, vector<8x40xf32>
    %c0_177 = arith.constant 0 : index
    %c0_178 = arith.constant 0 : index
    %167 = vector.load %arg8[%c0_177, %c0_178] : memref<40x128xf32, #tpu.memory_space<vmem>>, vector<40x128xf32>
    %cst_179 = arith.constant dense<0.000000e+00> : vector<8x128xf32>
    %168 = tpu.matmul %166, %167, %cst_179 {dimension_numbers = #tpu.dot_dimension_numbers<[1], [0], [0], [1], [0, 0, 1, 1], [], []>} : vector<8x40xf32>, vector<40x128xf32>, vector<8x128xf32> -> vector<8x128xf32>
    %c0_180 = arith.constant 0 : index
    %c0_181 = arith.constant 0 : index
    %169 = vector.load %arg9[%c0_180, %c0_181] : memref<8x128xf32, #tpu.memory_space<vmem>>, vector<8x128xf32>
    tpu.vector_store %arg9[%c0_180, %c0_181], %168 {strides = array<i32>} : memref<8x128xf32, #tpu.memory_space<vmem>>, vector<8x128xf32>,
    %c0_182 = arith.constant 0 : index
    %c0_183 = arith.constant 0 : index
    %170 = vector.load %arg9[%c0_182, %c0_183] : memref<8x128xf32, #tpu.memory_space<vmem>>, vector<8x128xf32>
    %cst_184 = arith.constant dense<0.000000e+00> : vector<8xf32>
    %171 = vector.multi_reduction <add>, %170, %cst_184 [1] : vector<8x128xf32> to vector<8xf32>
    %172 = vector.shape_cast %171 : vector<8xf32> to vector<8x1xf32>
    %c0_185 = arith.constant 0 : index
    %c0_186 = arith.constant 0 : index
    %c0_187 = arith.constant 0 : index
    %c0_188 = arith.constant 0 : index
    %173 = vector.load %arg6[%c0_185, %c0_186, %c0_187, %c0_188] : memref<1x1x8x1xf32, #tpu.memory_space<vmem>>, vector<1x1x8x1xf32>
    %174 = vector.shape_cast %173 : vector<1x1x8x1xf32> to vector<8x1xf32>
    %175 = vector.shape_cast %172 : vector<8x1xf32> to vector<1x1x8x1xf32>
    tpu.vector_store %arg6[%c0_185, %c0_186, %c0_187, %c0_188], %175 {strides = array<i32>} : memref<1x1x8x1xf32, #tpu.memory_space<vmem>>, vector<1x1x8x1xf32>,
    %176 = arith.mulf %170, %170 : vector<8x128xf32>
    %cst_189 = arith.constant dense<0.000000e+00> : vector<8xf32>
    %177 = vector.multi_reduction <add>, %176, %cst_189 [1] : vector<8x128xf32> to vector<8xf32>
    %178 = vector.shape_cast %177 : vector<8xf32> to vector<8x1xf32>
    %c0_190 = arith.constant 0 : index
    %c0_191 = arith.constant 0 : index
    %c0_192 = arith.constant 0 : index
    %c0_193 = arith.constant 0 : index
    %179 = vector.load %arg7[%c0_190, %c0_191, %c0_192, %c0_193] : memref<1x1x8x1xf32, #tpu.memory_space<vmem>>, vector<1x1x8x1xf32>
    %180 = vector.shape_cast %179 : vector<1x1x8x1xf32> to vector<8x1xf32>
    %181 = vector.shape_cast %178 : vector<8x1xf32> to vector<1x1x8x1xf32>
    tpu.vector_store %arg7[%c0_190, %c0_191, %c0_192, %c0_193], %181 {strides = array<i32>} : memref<1x1x8x1xf32, #tpu.memory_space<vmem>>, vector<1x1x8x1xf32>,
    %c0_194 = arith.constant 0 : index
    %c0_195 = arith.constant 0 : index
    %c0_196 = arith.constant 0 : index
    %182 = vector.load %arg5[%c0_194, %c0_195, %c0_196] : memref<1x8x128xf32, #tpu.memory_space<vmem>>, vector<1x8x128xf32>
    %183 = vector.shape_cast %182 : vector<1x8x128xf32> to vector<8x128xf32>
    %184 = vector.shape_cast %170 : vector<8x128xf32> to vector<1x8x128xf32>
    tpu.vector_store %arg5[%c0_194, %c0_195, %c0_196], %184 {strides = array<i32>} : memref<1x8x128xf32, #tpu.memory_space<vmem>>, vector<1x8x128xf32>,
    return
  }
  func.func @transform_0(%arg0: i32, %arg1: i32) -> (i32, i32, i32, i32, i32) {
    %c0_i32 = arith.constant 0 : i32
    %c0_i32_0 = arith.constant 0 : i32
    %c0_i32_1 = arith.constant 0 : i32
    %c0_i32_2 = arith.constant 0 : i32
    return %arg0, %arg1, %c0_i32, %c0_i32_0, %c0_i32_1 : i32, i32, i32, i32, i32
  }
  func.func @transform_1(%arg0: i32, %arg1: i32) -> (i32, i32, i32, i32, i32) {
    %c0_i32 = arith.constant 0 : i32
    %c0_i32_0 = arith.constant 0 : i32
    %c0_i32_1 = arith.constant 0 : i32
    %c0_i32_2 = arith.constant 0 : i32
    return %arg0, %arg1, %c0_i32, %c0_i32_0, %c0_i32_1 : i32, i32, i32, i32, i32
  }
  func.func @transform_2(%arg0: i32, %arg1: i32) -> (i32, i32) {
    %c0_i32 = arith.constant 0 : i32
    %c0_i32_0 = arith.constant 0 : i32
    %c0_i32_1 = arith.constant 0 : i32
    return %c0_i32, %c0_i32_0 : i32, i32
  }
  func.func @transform_3(%arg0: i32, %arg1: i32) -> (i32, i32, i32) {
    %c0_i32 = arith.constant 0 : i32
    %c0_i32_0 = arith.constant 0 : i32
    return %arg0, %c0_i32, %arg1 : i32, i32, i32
  }
  func.func @transform_4(%arg0: i32, %arg1: i32) -> (i32, i32, i32, i32) {
    %c0_i32 = arith.constant 0 : i32
    %c0_i32_0 = arith.constant 0 : i32
    %c0_i32_1 = arith.constant 0 : i32
    return %arg0, %arg1, %c0_i32, %c0_i32_0 : i32, i32, i32, i32
  }
  func.func @transform_5(%arg0: i32, %arg1: i32) -> (i32, i32, i32, i32) {
    %c0_i32 = arith.constant 0 : i32
    %c0_i32_0 = arith.constant 0 : i32
    %c0_i32_1 = arith.constant 0 : i32
    return %arg0, %arg1, %c0_i32, %c0_i32_0 : i32, i32, i32, i32
  }
}

</mosaic_0001>

<bundles_post_ra>
// kernel: conv_block_forward.3
= control target key start
LH: loop header
LB: loop body
LE: loop exit
PB: predicated region body
PF: predicated region fallthrough
CT: control target
= control target key end

     0   :  { %s407_s12 = smov 0   ;;  %s409_s13 = smov 0   ;;  %s446_s0 = inlined_call_operand.vmem [shape: f32[2,8,256], index: 0, kind: input, shape index: {}, may-alias: {0,3}]   ;;  %s447_s1 = inlined_call_operand.vmem [shape: f32[8,1], index: 1, kind: input, shape index: {}]   ;;  %s448_s2 = inlined_call_operand.vmem [shape: f32[8,1], index: 2, kind: input, shape index: {}]   ;;  %s449_s3 = inlined_call_operand.vmem [shape: f32[2,8,256], index: 3, kind: output, shape index: {}, may-alias: {0,3}]  }
   0x1   :  { %s411_s14 = smov 0  }
   0x2 LB: > { %s25_s15 = sadd.s32 1, %s380_s13  ;;  %p327_p0 = scmp.ge.s32.totalorder %s384_s14, 1  ;;  %s384_s14 = sphi %s411_s14, %s13_s14   ;;  %s380_s13 = sphi %s409_s13, %s451_s13   ;;  %s376_s12 = sphi %s407_s12, %s450_s12  }
   0x3   : > { %p27_p1 = scmp.ge.s32.totalorder %s25_s15, 2  ;;  %p158_p2 = scmp.lt.s32.totalorder %s384_s14, 3 }
   0x5   : > { %s453_s15 = smov (%p27_p1, %s25_s15), 0  ;;  %p159_p3 = pnand %p327_p0, %p158_p2 }
   0x6   : > { %v212_v0 = vld [vmem:[%s447_s1] sm:$0xff] (!%p159_p3)  ;;  %v386_v1 = vmov (!%p159_p3), 0   ;;  %p191_p4 = scmp.lt.s32.totalorder (!%p159_p3), %s376_s12, 1 }
   0x7   : > { %162 = sbr.rel (%p159_p3) target bundleno = 146 (0x92), region = 32  ;;  %361 = vset.pattern.permute.xlu0 (!%p159_p3), %v386_v1  ;;  %v220_v2 = vld [vmem:[%s448_s2] sm:$0xff] (!%p159_p3) }
   0x8   : > { %215 = vperm.xlu0 (!%p159_p3), %361, %v212_v0  }
   0xc   : > { %223 = vperm.xlu0 (!%p159_p3), %361, %v220_v2  }
   0xe   : > { %s455_s12 = smov (!%p191_p4, %s376_s12), 1 }
   0xf   : > { %s334_s20 = sshll.u32 %s455_s12, 4 }
  0x10   : > { %s198_s23 = scalar_lea.vmem %s446_s0, %s334_s20  ;;  %s208_s26 = scalar_lea.vmem %s449_s3, %s334_s20 }
  0x11   : > { %v210_v4 = vld [vmem:[%s198_s23] sm:$0xff]  ;;  %v211_v5 = vld [vmem:[%s198_s23 + $0x8] sm:$0xff] }
  0x87   : > { %v216_v3 = vpop.permute.xlu0 %215 }
  0x88   : > { %v218_v6 = vmul.f32 %v216_v3, %v210_v4  ;;  %v219_v7 = vmul.f32 %v216_v3, %v211_v5 }
  0x8b   : > { %v224_v8 = vpop.permute.xlu0 %223 }
  0x8c   : > { %v226_v9 = vadd.f32 %v224_v8, %v218_v6  ;;  %v227_v10 = vadd.f32 %v224_v8, %v219_v7 }
  0x8e   : > { %vm228_vm0 = vcmp.ge.f32.partialorder %v226_v9, 0.0  ;;  %vm229_vm1 = vcmp.ge.f32.partialorder %v227_v10, 0.0  ;;  %v230_v11 = vmul.f32 0.2, %v226_v9  ;;  %v231_v12 = vmul.f32 0.2, %v227_v10 }
  0x90   : > { %v232_v13 = vsel %vm228_vm0, %v226_v9, %v230_v11  ;;  %v233_v14 = vsel %vm229_vm1, %v227_v10, %v231_v12 }
  0x91   : > { %234 = vst [vmem:[%s208_s26] sm:$0xff] %v232_v13  ;;  %235 = vst [vmem:[%s208_s26 + $0x8] sm:$0xff] %v233_v14 }
  0x92 PF: > { %s13_s14 = sadd.s32 1, %s384_s14   ;;  %s450_s12 = smov %s380_s13 }
  0x93   : > { %p10_p5 = scmp.ge.s32.totalorder %s13_s14, 4   ;;  %s451_s13 = smov %s453_s15 }
  0x95   :  { %12 = sbr.rel (!%p10_p5) target bundleno = 2 (0x2), region = 62 }

// kernel: conv_block_forward.2
= control target key start
LH: loop header
LB: loop body
LE: loop exit
PB: predicated region body
PF: predicated region fallthrough
CT: control target
= control target key end

     0   :  { %s1160_s18 = smov 0   ;;  %s1162_s19 = smov 0   ;;  %s1455_s0 = inlined_call_operand.vmem [shape: f32[2,2,8,4,18], index: 0, kind: input, shape index: {}]   ;;  %s1456_s1 = inlined_call_operand.vmem [shape: f32[2,2,2,4,18], index: 1, kind: input, shape index: {}]   ;;  %s1457_s2 = inlined_call_operand.vmem [shape: f32[8,40], index: 2, kind: input, shape index: {}]   ;;  %s1458_s3 = inlined_call_operand.vmem [shape: f32[2,8,256], index: 3, kind: output, shape index: {0}]   ;;  %s1459_s4 = inlined_call_operand.vmem [shape: f32[2,2,8,1], index: 4, kind: output, shape index: {1}]   ;;  %s1460_s5 = inlined_call_operand.vmem [shape: f32[2,2,8,1], index: 5, kind: output, shape index: {2}]  }
   0x1   :  { %s1164_s20 = smov 0   ;;  %s1166_s21 = smov 0  }
   0x2   :  { %s1168_s22 = smov 0  }
   0x3 LB: > { %s25_s23 = sadd.s32 1, %s1094_s20  ;;  %s28_s24 = sadd.s32 1, %s1098_s21  ;;  %s1102_s22 = sphi %s1168_s22, %s16_s22   ;;  %s1098_s21 = sphi %s1166_s21, %s1480_s21   ;;  %s1094_s20 = sphi %s1164_s20, %s1479_s20   ;;  %s1090_s19 = sphi %s1162_s19, %s1478_s19   ;;  %s1086_s18 = sphi %s1160_s18, %s1477_s18  }
   0x4   : > { %p26_p0 = scmp.ge.s32.totalorder %s25_s23, 2  ;;  %p949_p1 = scmp.ge.s32.totalorder %s1102_s22, 1 }
   0x5   : > { %p232_p2 = scmp.lt.s32.totalorder %s1102_s22, 5 }
   0x6   : > { %s1482_s23 = smov (%p26_p0, %s25_s23), 0  ;;  %s1484_s24 = smov (!%p26_p0, %s28_s24), %s1098_s21 }
   0x7   : > { %p233_p3 = pnand %p949_p1, %p232_p2  ;;  %p30_p4 = scmp.ge.s32.totalorder %s1484_s24, 2 }
   0x8   : > { %p292_p5 = scmp.lt.s32.totalorder (!%p233_p3), %s1090_s19, 1  ;;  %p294_p6 = scmp.lt.s32.totalorder (!%p233_p3), %s1086_s18, 1  ;;  %vm336_vm0 = vcmask (!%p233_p3), 125952   ;;  %v1127_v9 = vmov (!%p233_p3), 0.0|0.0   ;;  %vm353_vm1 = vcmask (!%p233_p3), 257152   ;;  %v1128_v17 = vmov (!%p233_p3), 0.0  }
   0x9   : > { %s1486_s24 = smov (%p30_p4, %s1484_s24), 0  ;;  %236 = sbr.rel (%p233_p3) target bundleno = 639 (0x27f), region = 32 }
   0xa   : > { %s1104_s7 = smov (!%p233_p3), 127   ;;  %s1105_s8 = smov (!%p233_p3), 16   ;;  %992 = vmatprep.subr.bf16.mxu0 (!%p233_p3), %v1127_v9  ;;  %334 = vst [vmem:[#allocation2 + $0x24] sm:$0xf] (!%p233_p3), %v1128_v17  ;;  %vm378_vm2 = vcmask (!%p233_p3), 388352   ;;  %vm1129_vm3 = vmmov (!%p233_p3), 0  }
   0xb   : > { %s1468_s9 = smov (!%p233_p3), 126   ;;  %s1107_s10 = smov (!%p233_p3), 15   ;;  %989 = vmatprep.mubr.msk.f32.mxu0 (!%p233_p3), %vm1129_vm3, %v1128_v17  ;;  %vm415_vm4 = vcmask (!%p233_p3), 519552   ;;  %vm455_vm5 = vcmask (!%p233_p3), 650752   ;;  %vm495_vm6 = vcmask (!%p233_p3), 781952   ;;  %vm535_vm7 = vcmask (!%p233_p3), 913152  }
   0xc   : > { %s1462_s11 = smov (!%p233_p3), 14   ;;  %s1109_s12 = smov (!%p233_p3), 32   ;;  %vm575_vm8 = vcmask (!%p233_p3), 1044352   ;;  %vm656_vm9 = vcmask (!%p233_p3), 326656   ;;  %vm734_vm10 = vcmask (!%p233_p3), 7168  }
   0xd   : > { %s1110_s13 = smov (!%p233_p3), 31   ;;  %s1461_s14 = smov (!%p233_p3), 30  }
   0xe   : > { %s1112_s15 = smov (!%p233_p3), 48   ;;  %s1113_s16 = smov (!%p233_p3), 47  }
   0xf   : > { %s1469_s17 = smov (!%p233_p3), 46   ;;  %s1119_s29 = smov (!%p233_p3), 79  }
  0x10   : > { %s1488_s19 = smov (!%p292_p5, %s1090_s19), 1  ;;  %s1490_s18 = smov (!%p294_p6, %s1086_s18), 1 }
  0x11   : > { %s951_s25 = sshll.u32 %s1488_s19, 4  ;;  %s950_s26 = sshll.u32 %s1490_s18, 3 }
  0x12   : > { %s298_s27 = sadd.s32 %s951_s25, %s950_s26  ;;  %s1115_s25 = smov 64  }
  0x13   : > { %s952_s28 = sshll.u32 %s298_s27, 2  ;;  %s1116_s26 = smov 63  }
  0x14   : > { %s1199_s6 = scalar_lea.vmem %s1455_s0, %s952_s28  ;;  %s1117_s27 = smov 62  }
  0x15   : > { %v335_v0 = vld [vmem:[%s1199_s6] sm:$0xf]  ;;  %v962_v1 = vld [vmem:[%s1199_s6 + $0x4] sm:$0xf]  ;;  %v1204_v2 = vld [vmem:[%s1199_s6 + $0x8] sm:$0xf] }
  0x16   : > { %339 = vrot.lane.b32.xlu0 %v335_v0, %s1104_s7  ;;  %350 = vrot.lane.b32.xlu1 %v962_v1, %s1105_s8  ;;  %337 = vst.msk [vmem:[#allocation2] sm:$0xf] %vm336_vm0, %v335_v0  ;;  %363 = vst.msk [vmem:[#allocation2 + $0xc] sm:$0xf] %vm336_vm0, %v962_v1  ;;  %v1222_v3 = vld [vmem:[%s1199_s6 + $0xc] sm:$0xf] }
  0x17   : > { %400 = vst.msk [vmem:[#allocation2 + $0x18] sm:$0xf] %vm336_vm0, %v1204_v2  ;;  %v1233_v4 = vld [vmem:[%s1199_s6 + $0x10] sm:$0xf]  ;;  %v1250_v5 = vld [vmem:[%s1199_s6 + $0x14] sm:$0xf] }
  0x18   : > { %s1118_s28 = smov 80   ;;  %s1120_s30 = smov 78   ;;  %v1269_v6 = vld [vmem:[%s1199_s6 + $0x18] sm:$0xf]  ;;  %v1288_v7 = vld [vmem:[%s1199_s6 + $0x1c] sm:$0xf] }
  0x19   : > { %s1124_s6 = smov 112  }
  0x1a   : > { %343 = vrot.lane.b32.xlu0 %v335_v0, %s1468_s9  ;;  %355 = vrot.lane.b32.xlu1 %v962_v1, %s1107_s10 }
  0x1e   : > { %359 = vrot.lane.b32.xlu0 %v962_v1, %s1462_s11  ;;  %388 = vrot.lane.b32.xlu1 %v1204_v2, %s1105_s8 }
  0x22   : > { %375 = vrot.lane.b32.xlu0 %v1204_v2, %s1109_s12  ;;  %380 = vrot.lane.b32.xlu1 %v1204_v2, %s1110_s13 }
  0x26   : > { %384 = vrot.lane.b32.xlu0 %v1204_v2, %s1461_s14  ;;  %425 = vrot.lane.b32.xlu1 %v1222_v3, %s1109_s12 }
  0x2a   : > { %412 = vrot.lane.b32.xlu0 %v1222_v3, %s1112_s15  ;;  %417 = vrot.lane.b32.xlu1 %v1222_v3, %s1113_s16 }
  0x2e   : > { %421 = vrot.lane.b32.xlu0 %v1222_v3, %s1469_s17  ;;  %465 = vrot.lane.b32.xlu1 %v1233_v4, %s1112_s15 }
  0x32   : > { %364 = vrot.lane.b32.xlu0 %v962_v1, %s1104_s7  ;;  %368 = vrot.lane.b32.xlu1 %v962_v1, %s1468_s9  ;;  %s1125_s9 = smov 111  }
  0x36   : > { %401 = vrot.lane.b32.xlu0 %v1204_v2, %s1104_s7  ;;  %452 = vrot.lane.b32.xlu1 %v1233_v4, %s1115_s25  ;;  %s1463_s7 = smov 96  }
  0x3a   : > { %457 = vrot.lane.b32.xlu0 %v1233_v4, %s1116_s26  ;;  %461 = vrot.lane.b32.xlu1 %v1233_v4, %s1117_s27 }
  0x3e   : > { %505 = vrot.lane.b32.xlu0 %v1250_v5, %s1115_s25  ;;  %392 = vrot.lane.b32.xlu1 %v1204_v2, %s1107_s10 }
  0x42   : > { %396 = vrot.lane.b32.xlu0 %v1204_v2, %s1462_s11  ;;  %437 = vrot.lane.b32.xlu1 %v1222_v3, %s1105_s8  ;;  %s1466_s8 = smov 95  }
  0x46   : > { %441 = vrot.lane.b32.xlu0 %v1222_v3, %s1107_s10  ;;  %492 = vrot.lane.b32.xlu1 %v1250_v5, %s1118_s28  ;;  %s1464_s10 = smov 94  }
  0x4a   : > { %497 = vrot.lane.b32.xlu0 %v1250_v5, %s1119_s29  ;;  %501 = vrot.lane.b32.xlu1 %v1250_v5, %s1120_s30 }
  0x4e   : > { %545 = vrot.lane.b32.xlu0 %v1269_v6, %s1118_s28  ;;  %429 = vrot.lane.b32.xlu1 %v1222_v3, %s1110_s13 }
  0x52   : > { %433 = vrot.lane.b32.xlu0 %v1222_v3, %s1461_s14  ;;  %477 = vrot.lane.b32.xlu1 %v1233_v4, %s1109_s12  ;;  %s953_s12 = sshll.u32 %s1490_s18, 1 }
  0x56   : > { %481 = vrot.lane.b32.xlu0 %v1233_v4, %s1110_s13  ;;  %532 = vrot.lane.b32.xlu1 %v1269_v6, %s1463_s7  ;;  %s954_s13 = sshll.u32 %s1488_s19, 2 }
  0x57   : > { %s307_s14 = sadd.s32 %s954_s13, %s953_s12 }
  0x58   : > { %s955_s11 = sshll.u32 %s307_s14, 2  ;;  %s1471_s14 = smov 95  }
  0x5a   : > { %537 = vrot.lane.b32.xlu0 %v1269_v6, %s1466_s8  ;;  %541 = vrot.lane.b32.xlu1 %v1269_v6, %s1464_s10  ;;  %s309_s8 = scalar_lea.vmem %s1456_s1, %s955_s11  ;;  %s1470_s11 = smov 126  }
  0x5b   : > { %v609_v8 = vld [vmem:[%s309_s8] sm:$0xf]  ;;  %v969_v12 = vld [vmem:[%s309_s8 + $0x4] sm:$0xf] }
  0x5e   : > { %585 = vrot.lane.b32.xlu0 %v1288_v7, %s1463_s7  ;;  %469 = vrot.lane.b32.xlu1 %v1233_v4, %s1113_s16 }
  0x62   : > { %473 = vrot.lane.b32.xlu0 %v1233_v4, %s1469_s17  ;;  %517 = vrot.lane.b32.xlu1 %v1250_v5, %s1112_s15  ;;  %s1126_s17 = smov 110   ;;  %s1472_s15 = smov 94  }
  0x66   : > { %521 = vrot.lane.b32.xlu0 %v1250_v5, %s1113_s16  ;;  %572 = vrot.lane.b32.xlu1 %v1288_v7, %s1124_s6  ;;  %s1473_s16 = smov 96  }
  0x6a   : > { %577 = vrot.lane.b32.xlu0 %v1288_v7, %s1125_s9  ;;  %581 = vrot.lane.b32.xlu1 %v1288_v7, %s1126_s17 }
  0x6e   : > { %611 = vrot.lane.b32.xlu0 %v609_v8, %s1124_s6  ;;  %509 = vrot.lane.b32.xlu1 %v1250_v5, %s1116_s26 }
  0x72   : > { %513 = vrot.lane.b32.xlu0 %v1250_v5, %s1117_s27  ;;  %557 = vrot.lane.b32.xlu1 %v1269_v6, %s1115_s25  ;;  %s1474_s25 = smov 14  }
  0x76   : > { %561 = vrot.lane.b32.xlu0 %v1269_v6, %s1116_s26  ;;  %549 = vrot.lane.b32.xlu1 %v1269_v6, %s1119_s29  ;;  %s1475_s26 = smov 30  }
  0x7a   : > { %553 = vrot.lane.b32.xlu0 %v1269_v6, %s1120_s30  ;;  %597 = vrot.lane.b32.xlu1 %v1288_v7, %s1118_s28  ;;  %s1476_s28 = smov 46  }
  0x7e   : > { %601 = vrot.lane.b32.xlu0 %v1288_v7, %s1119_s29  ;;  %405 = vrot.lane.b32.xlu1 %v1204_v2, %s1470_s11 }
  0x82   : > { %589 = vrot.lane.b32.xlu0 %v1288_v7, %s1471_s14  ;;  %593 = vrot.lane.b32.xlu1 %v1288_v7, %s1472_s15 }
  0x86   : > { %623 = vrot.lane.b32.xlu0 %v609_v8, %s1473_s16  ;;  %627 = vrot.lane.b32.xlu1 %v609_v8, %s1471_s14 }
  0x88   : > { %v340_v10 = vpop.permute.xlu0 %339  ;;  %v351_v11 = vpop.permute.xlu1 %350 }
  0x89   : > { %342 = vst.msk [vmem:[#allocation2 + $0x4] sm:$0xf] %vm336_vm0, %v340_v10 }
  0x8a   : > { %354 = vst.msk [vmem:[#allocation2] sm:$0xf] %vm353_vm1, %v351_v11  ;;  %445 = vrot.lane.b32.xlu0 %v1222_v3, %s1474_s25  ;;  %615 = vrot.lane.b32.xlu1 %v609_v8, %s1125_s9 }
  0x8c   : > { %v344_v13 = vpop.permute.xlu0 %343  ;;  %v356_v14 = vpop.permute.xlu1 %355 }
  0x8d   : > { %346 = vst.msk [vmem:[#allocation2 + $0x8] sm:$0xf] %vm336_vm0, %v344_v13 }
  0x8e   : > { %358 = vst.msk [vmem:[#allocation2 + $0x4] sm:$0xf] %vm353_vm1, %v356_v14  ;;  %619 = vrot.lane.b32.xlu0 %v609_v8, %s1126_s17  ;;  %638 = vrot.lane.b32.xlu1 %v969_v12, %s1124_s6 }
  0x90   : > { %v360_v15 = vpop.permute.xlu0 %359  ;;  %v389_v16 = vpop.permute.xlu1 %388 }
  0x91   : > { %362 = vst.msk [vmem:[#allocation2 + $0x8] sm:$0xf] %vm353_vm1, %v360_v15  ;;  %391 = vst.msk [vmem:[#allocation2 + $0xc] sm:$0xf] %vm353_vm1, %v389_v16 }
  0x92   : > { %642 = vrot.lane.b32.xlu0 %v969_v12, %s1125_s9  ;;  %485 = vrot.lane.b32.xlu1 %v1233_v4, %s1475_s26 }
  0x94   : > { %v376_v18 = vpop.permute.xlu0 %375  ;;  %v381_v19 = vpop.permute.xlu1 %380 }
  0x95   : > { %379 = vst.msk [vmem:[#allocation2] sm:$0xf] %vm378_vm2, %v376_v18  ;;  %383 = vst.msk [vmem:[#allocation2 + $0x4] sm:$0xf] %vm378_vm2, %v381_v19 }
  0x96   : > { %525 = vrot.lane.b32.xlu0 %v1250_v5, %s1476_s28  ;;  %565 = vrot.lane.b32.xlu1 %v1269_v6, %s1117_s27  ;;  %s956_s27 = sshll.u32 %s1488_s19, 1 }
  0x97   : > { %s315_s29 = sadd.s32 %s956_s27, %s1490_s18 }
  0x98   : > { %v385_v20 = vpop.permute.xlu0 %384  ;;  %v426_v21 = vpop.permute.xlu1 %425 }
  0x99   : > { %387 = vst.msk [vmem:[#allocation2 + $0x8] sm:$0xf] %vm378_vm2, %v385_v20  ;;  %428 = vst.msk [vmem:[#allocation2 + $0xc] sm:$0xf] %vm378_vm2, %v426_v21 }
  0x9a   : > { %605 = vrot.lane.b32.xlu0 %v1288_v7, %s1120_s30  ;;  %631 = vrot.lane.b32.xlu1 %v609_v8, %s1472_s15  ;;  %s957_s30 = sshll.u32 %s315_s29, 3 }
  0x9b   : > { %s317_s10 = scalar_lea.vmem %s1458_s3, %s957_s30  ;;  %s325_s6 = scalar_lea.vmem %s1459_s4, %s957_s30 }
  0x9c   : > { %v413_v22 = vpop.permute.xlu0 %412  ;;  %v418_v23 = vpop.permute.xlu1 %417  ;;  %s333_s18 = scalar_lea.vmem %s1460_s5, %s957_s30 }
  0x9d   : > { %416 = vst.msk [vmem:[#allocation2] sm:$0xf] %vm415_vm4, %v413_v22  ;;  %420 = vst.msk [vmem:[#allocation2 + $0x4] sm:$0xf] %vm415_vm4, %v418_v23 }
  0x9e   : > { %646 = vrot.lane.b32.xlu0 %v969_v12, %s1126_s17 }
  0xa0   : > { %v422_v24 = vpop.permute.xlu0 %421  ;;  %v466_v25 = vpop.permute.xlu1 %465 }
  0xa1   : > { %424 = vst.msk [vmem:[#allocation2 + $0x8] sm:$0xf] %vm415_vm4, %v422_v24  ;;  %468 = vst.msk [vmem:[#allocation2 + $0xc] sm:$0xf] %vm415_vm4, %v466_v25  ;;  %v650_v24 = vld [vmem:[%s1457_s2] sm:$0xff] }
  0xa4   : > { %v365_v26 = vpop.permute.xlu0 %364  ;;  %v369_v27 = vpop.permute.xlu1 %368 }
  0xa5   : > { %367 = vst.msk [vmem:[#allocation2 + $0x10] sm:$0xf] %vm336_vm0, %v365_v26  ;;  %371 = vst.msk [vmem:[#allocation2 + $0x14] sm:$0xf] %vm336_vm0, %v369_v27 }
  0xa8   : > { %v402_v28 = vpop.permute.xlu0 %401  ;;  %v453_v29 = vpop.permute.xlu1 %452 }
  0xa9   : > { %404 = vst.msk [vmem:[#allocation2 + $0x1c] sm:$0xf] %vm336_vm0, %v402_v28 }
  0xaa   : > { %456 = vst.msk [vmem:[#allocation2] sm:$0xf] %vm455_vm5, %v453_v29 }
  0xac   : > { %v458_v30 = vpop.permute.xlu0 %457  ;;  %v462_v31 = vpop.permute.xlu1 %461 }
  0xad   : > { %460 = vst.msk [vmem:[#allocation2 + $0x4] sm:$0xf] %vm455_vm5, %v458_v30  ;;  %464 = vst.msk [vmem:[#allocation2 + $0x8] sm:$0xf] %vm455_vm5, %v462_v31 }
  0xb0   : > { %v506_v32 = vpop.permute.xlu0 %505  ;;  %v393_v33 = vpop.permute.xlu1 %392 }
  0xb1   : > { %508 = vst.msk [vmem:[#allocation2 + $0xc] sm:$0xf] %vm455_vm5, %v506_v32 }
  0xb2   : > { %395 = vst.msk [vmem:[#allocation2 + $0x10] sm:$0xf] %vm353_vm1, %v393_v33 }
  0xb4   : > { %v397_v34 = vpop.permute.xlu0 %396  ;;  %v438_v35 = vpop.permute.xlu1 %437 }
  0xb5   : > { %399 = vst.msk [vmem:[#allocation2 + $0x14] sm:$0xf] %vm353_vm1, %v397_v34  ;;  %440 = vst.msk [vmem:[#allocation2 + $0x18] sm:$0xf] %vm353_vm1, %v438_v35 }
  0xb8   : > { %v442_v36 = vpop.permute.xlu0 %441  ;;  %v493_v37 = vpop.permute.xlu1 %492 }
  0xb9   : > { %444 = vst.msk [vmem:[#allocation2 + $0x1c] sm:$0xf] %vm353_vm1, %v442_v36 }
  0xba   : > { %496 = vst.msk [vmem:[#allocation2] sm:$0xf] %vm495_vm6, %v493_v37 }
  0xbc   : > { %v498_v38 = vpop.permute.xlu0 %497  ;;  %v502_v39 = vpop.permute.xlu1 %501 }
  0xbd   : > { %500 = vst.msk [vmem:[#allocation2 + $0x4] sm:$0xf] %vm495_vm6, %v498_v38  ;;  %504 = vst.msk [vmem:[#allocation2 + $0x8] sm:$0xf] %vm495_vm6, %v502_v39 }
  0xc0   : > { %v546_v40 = vpop.permute.xlu0 %545  ;;  %v430_v41 = vpop.permute.xlu1 %429 }
  0xc1   : > { %548 = vst.msk [vmem:[#allocation2 + $0xc] sm:$0xf] %vm495_vm6, %v546_v40 }
  0xc2   : > { %432 = vst.msk [vmem:[#allocation2 + $0x10] sm:$0xf] %vm378_vm2, %v430_v41 }
  0xc4   : > { %v434_v42 = vpop.permute.xlu0 %433  ;;  %v478_v43 = vpop.permute.xlu1 %477 }
  0xc5   : > { %436 = vst.msk [vmem:[#allocation2 + $0x14] sm:$0xf] %vm378_vm2, %v434_v42  ;;  %480 = vst.msk [vmem:[#allocation2 + $0x18] sm:$0xf] %vm378_vm2, %v478_v43 }
  0xc8   : > { %v482_v44 = vpop.permute.xlu0 %481  ;;  %v533_v45 = vpop.permute.xlu1 %532 }
  0xc9   : > { %484 = vst.msk [vmem:[#allocation2 + $0x1c] sm:$0xf] %vm378_vm2, %v482_v44 }
  0xca   : > { %536 = vst.msk [vmem:[#allocation2] sm:$0xf] %vm535_vm7, %v533_v45 }
  0xcc   : > { %v538_v46 = vpop.permute.xlu0 %537  ;;  %v542_v47 = vpop.permute.xlu1 %541 }
  0xcd   : > { %540 = vst.msk [vmem:[#allocation2 + $0x4] sm:$0xf] %vm535_vm7, %v538_v46  ;;  %544 = vst.msk [vmem:[#allocation2 + $0x8] sm:$0xf] %vm535_vm7, %v542_v47 }
  0xd0   : > { %v586_v48 = vpop.permute.xlu0 %585  ;;  %v470_v49 = vpop.permute.xlu1 %469 }
  0xd1   : > { %588 = vst.msk [vmem:[#allocation2 + $0xc] sm:$0xf] %vm535_vm7, %v586_v48 }
  0xd2   : > { %472 = vst.msk [vmem:[#allocation2 + $0x10] sm:$0xf] %vm415_vm4, %v470_v49 }
  0xd4   : > { %v474_v50 = vpop.permute.xlu0 %473  ;;  %v518_v51 = vpop.permute.xlu1 %517 }
  0xd5   : > { %476 = vst.msk [vmem:[#allocation2 + $0x14] sm:$0xf] %vm415_vm4, %v474_v50  ;;  %520 = vst.msk [vmem:[#allocation2 + $0x18] sm:$0xf] %vm415_vm4, %v518_v51 }
  0xd8   : > { %v522_v52 = vpop.permute.xlu0 %521  ;;  %v573_v53 = vpop.permute.xlu1 %572 }
  0xd9   : > { %524 = vst.msk [vmem:[#allocation2 + $0x1c] sm:$0xf] %vm415_vm4, %v522_v52 }
  0xda   : > { %576 = vst.msk [vmem:[#allocation2] sm:$0xf] %vm575_vm8, %v573_v53 }
  0xdc   : > { %v578_v54 = vpop.permute.xlu0 %577  ;;  %v582_v55 = vpop.permute.xlu1 %581 }
  0xdd   : > { %580 = vst.msk [vmem:[#allocation2 + $0x4] sm:$0xf] %vm575_vm8, %v578_v54  ;;  %584 = vst.msk [vmem:[#allocation2 + $0x8] sm:$0xf] %vm575_vm8, %v582_v55 }
  0xe0   : > { %v612_v56 = vpop.permute.xlu0 %611  ;;  %v510_v57 = vpop.permute.xlu1 %509 }
  0xe1   : > { %614 = vst.msk [vmem:[#allocation2 + $0xc] sm:$0xf] %vm575_vm8, %v612_v56 }
  0xe2   : > { %512 = vst.msk [vmem:[#allocation2 + $0x10] sm:$0xf] %vm455_vm5, %v510_v57 }
  0xe4   : > { %v514_v58 = vpop.permute.xlu0 %513  ;;  %v558_v59 = vpop.permute.xlu1 %557  ;;  %v651_v62 = vld [vmem:[#allocation2] sm:$0xff] }
  0xe5   : > { %516 = vst.msk [vmem:[#allocation2 + $0x14] sm:$0xf] %vm455_vm5, %v514_v58  ;;  %560 = vst.msk [vmem:[#allocation2 + $0x18] sm:$0xf] %vm455_vm5, %v558_v59 }
  0xe8   : > { %v562_v60 = vpop.permute.xlu0 %561  ;;  %v550_v61 = vpop.permute.xlu1 %549  ;;  %v652_v63 = vld [vmem:[#allocation2 + $0x8] sm:$0xff] }
  0xe9   : > { %564 = vst.msk [vmem:[#allocation2 + $0x1c] sm:$0xf] %vm455_vm5, %v562_v60  ;;  %v993_v0 = vpack.c.bf16 %v652_v63, %v651_v62 }
  0xea   : > { %552 = vst.msk [vmem:[#allocation2 + $0x10] sm:$0xf] %vm495_vm6, %v550_v61 }
  0xeb   : > { %994 = vmatpush3.bf16.msra.mxu0 %v993_v0 }
  0xec   : > { %v554_v1 = vpop.permute.xlu0 %553  ;;  %v598_v2 = vpop.permute.xlu1 %597  ;;  %995 = vmatprep.subr.bf16.mxu0 %v1127_v9 }
  0xed   : > { %556 = vst.msk [vmem:[#allocation2 + $0x14] sm:$0xf] %vm495_vm6, %v554_v1  ;;  %600 = vst.msk [vmem:[#allocation2 + $0x18] sm:$0xf] %vm495_vm6, %v598_v2 }
  0xf0   : > { %v602_v3 = vpop.permute.xlu0 %601  ;;  %v406_v4 = vpop.permute.xlu1 %405 }
  0xf1   : > { %604 = vst.msk [vmem:[#allocation2 + $0x1c] sm:$0xf] %vm495_vm6, %v602_v3 }
  0xf2   : > { %408 = vst.msk [vmem:[#allocation2 + $0x20] sm:$0xf] %vm336_vm0, %v406_v4 }
  0xf4   : > { %v590_v5 = vpop.permute.xlu0 %589  ;;  %v594_v6 = vpop.permute.xlu1 %593 }
  0xf5   : > { %592 = vst.msk [vmem:[#allocation2 + $0x10] sm:$0xf] %vm535_vm7, %v590_v5  ;;  %596 = vst.msk [vmem:[#allocation2 + $0x14] sm:$0xf] %vm535_vm7, %v594_v6 }
  0xf8   : > { %v624_v7 = vpop.permute.xlu0 %623  ;;  %v628_v8 = vpop.permute.xlu1 %627 }
  0xf9   : > { %626 = vst.msk [vmem:[#allocation2 + $0x18] sm:$0xf] %vm535_vm7, %v624_v7  ;;  %630 = vst.msk [vmem:[#allocation2 + $0x1c] sm:$0xf] %vm535_vm7, %v628_v8 }
  0xfc   : > { %v446_v9 = vpop.permute.xlu0 %445  ;;  %v616_v10 = vpop.permute.xlu1 %615 }
  0xfd   : > { %448 = vst.msk [vmem:[#allocation2 + $0x20] sm:$0xf] %vm353_vm1, %v446_v9 }
  0xfe   : > { %618 = vst.msk [vmem:[#allocation2 + $0x10] sm:$0xf] %vm575_vm8, %v616_v10 }
 0x100   : > { %v620_v11 = vpop.permute.xlu0 %619  ;;  %v639_v12 = vpop.permute.xlu1 %638 }
 0x101   : > { %622 = vst.msk [vmem:[#allocation2 + $0x14] sm:$0xf] %vm575_vm8, %v620_v11  ;;  %641 = vst.msk [vmem:[#allocation2 + $0x18] sm:$0xf] %vm575_vm8, %v639_v12 }
 0x104   : > { %v643_v13 = vpop.permute.xlu0 %642  ;;  %v486_v14 = vpop.permute.xlu1 %485 }
 0x105   : > { %645 = vst.msk [vmem:[#allocation2 + $0x1c] sm:$0xf] %vm575_vm8, %v643_v13 }
 0x106   : > { %488 = vst.msk [vmem:[#allocation2 + $0x20] sm:$0xf] %vm378_vm2, %v486_v14 }
 0x108   : > { %v526_v15 = vpop.permute.xlu0 %525  ;;  %v566_v16 = vpop.permute.xlu1 %565  ;;  %v653_v20 = vld [vmem:[#allocation2 + $0x10] sm:$0xff] }
 0x109   : > { %528 = vst.msk [vmem:[#allocation2 + $0x20] sm:$0xf] %vm415_vm4, %v526_v15 }
 0x10a   : > { %568 = vst.msk [vmem:[#allocation2 + $0x20] sm:$0xf] %vm455_vm5, %v566_v16 }
 0x10c   : > { %v606_v18 = vpop.permute.xlu0 %605  ;;  %v632_v19 = vpop.permute.xlu1 %631  ;;  %v654_v21 = vld [vmem:[#allocation2 + $0x18] sm:$0xff] }
 0x10d   : > { %608 = vst.msk [vmem:[#allocation2 + $0x20] sm:$0xf] %vm495_vm6, %v606_v18  ;;  %v996_v22 = vpack.c.bf16 %v654_v21, %v653_v20 }
 0x10e   : > { %634 = vst.msk [vmem:[#allocation2 + $0x20] sm:$0xf] %vm535_vm7, %v632_v19 }
 0x10f   : > { %997 = vmatpush3.bf16.msra.mxu0 %v996_v22 }
 0x110   : > { %v647_v23 = vpop.permute.xlu0 %646  ;;  %987 = vmatprep.subr.mxu0 %v1128_v17 }
 0x111   : > { %649 = vst.msk [vmem:[#allocation2 + $0x20] sm:$0xf] %vm575_vm8, %v647_v23 }
 0x118   : > { %v655_v25 = vld [vmem:[#allocation2 + $0x20] sm:$0xff] }
 0x119   : > { %988 = vmatpush3.msra.mxu0 %v655_v25 }
 0x11a   : > { %990 = vmatmul.mubr.msk.f32.vlgmr.msra.gmra.mrb[0].mxu0 %vm656_vm9, %v650_v24 }
 0x1ed   : > { %v726_v26 = vpop.f32.mrb[0].mxu0 }
 0x1ee   : > { %740 = vst [vmem:[%s317_s10] sm:$0xff] %v726_v26  ;;  %732 = vadd.xlane.f32.xlu1 %v726_v26  ;;  %v991_v17 = vpop.f32.mrb[1].mxu0  ;;  %v736_v27 = vmul.f32 %v726_v26, %v726_v26 }
 0x1f0   : > { %737 = vadd.xlane.f32.xlu0 %v736_v27 }
 0x27b   : > { %v733_v28 = vpop.xlane.xlu1 %732 }
 0x27c   : > { %735 = vst.msk [vmem:[%s325_s6] sm:$0xff] %vm734_vm10, %v733_v28 }
 0x27d   : > { %v738_v29 = vpop.xlane.xlu0 %737 }
 0x27e   : > { %739 = vst.msk [vmem:[%s333_s18] sm:$0xff] %vm734_vm10, %v738_v29 }
 0x27f PF: > { %s16_s22 = sadd.s32 1, %s1102_s22   ;;  %s1477_s18 = smov %s1094_s20 }
 0x280   : > { %p13_p7 = scmp.ge.s32.totalorder %s16_s22, 6   ;;  %s1478_s19 = smov %s1098_s21 }
 0x281   : > { %s1479_s20 = smov %s1482_s23  ;;  %s1480_s21 = smov %s1486_s24 }
 0x282   :  { %15 = sbr.rel (!%p13_p7) target bundleno = 3 (0x3), region = 97 }

</bundles_post_ra>
